<compile_context>
chip_gen: v6e
topology: v6e:2x2x1
jax: 0.10.0
libtpu: 0.0.40
codegen_flags: <defaults>
</compile_context>

<pallas_src>
import numpy as np
import jax
import jax.numpy as jnp
from jax.experimental import pallas as pl
from jax.experimental.pallas import tpu as pltpu

# ---------------- configuration (small synthetic CLIP) ----------------
B        = 2      # batch
C        = 3      # image channels
IMSIZE   = 32     # cfg.INPUT.SIZE[0] == clip_imsize
PAD      = 4      # PadPrompter pad size
PATCH    = 8      # ViT patch size
VIS_W    = 128    # visual transformer width
TXT_W    = 128    # text transformer width
EMBED    = 128    # joint embedding dim
N_CLS    = 4      # number of classnames
N_CTX    = 4      # cfg.TRAINER.VP.N_CTX
SEQ      = 16     # tokenized prompt length
VOCAB    = 64     # toy vocab

NPATCH   = (IMSIZE // PATCH) ** 2   # patches per image (16)
KP_RAW   = C * PATCH * PATCH        # raw patch feature dim (192)
KP       = 256                      # zero-padded K dim (lane/MXU friendly)
B_PAD    = 8                        # sublane-padded batch for the logits slab
N_PAD    = 128                      # lane-padded class dim for the logits slab


# ---------------- the single fused forward kernel ----------------
def _fused_clip_kernel(scale_ref,                      # SMEM (1,)
                       imgp_ref, prmp_ref,             # (B*NP, KP), (NP, KP)  f32
                       pw_ref, pb_ref, vpos_ref,       # (KP, VIS_W) bf16, (1, VIS_W), (NP, VIS_W)
                       pool_ref, vproj_ref,            # (B_PAD, B*NP) f32, (VIS_W, EMBED) bf16
                       temb_ref,                       # (N_CLS*SEQ, TXT_W) f32
                       w1_ref, b1_ref, w2_ref, b2_ref, # bf16 weights / f32 biases
                       tproj_ref,                      # (TXT_W, EMBED) bf16
                       sel_ref,                        # (N_PAD, N_CLS*SEQ) EOT one-hot (padded)
                       out_ref):                       # (B_PAD, N_PAD) f32
    f32, bf16 = jnp.float32, jnp.bfloat16

    # ---- visual branch: prompter(image) fused with patch-embed ----
    # prompt broadcast over batch done in-kernel (no wrapper broadcast_to)
    x_in = imgp_ref[...] + jnp.tile(prmp_ref[...], (B, 1))                 # (B*NP, KP)
    h = jnp.dot(x_in.astype(bf16), pw_ref[...],
                preferred_element_type=f32)                                # (B*NP, VIS_W)
    h = h + jnp.tile(vpos_ref[...], (B, 1)) + pb_ref[...]                  # pos + bias fused
    h = jax.nn.gelu(h)                                                     # f32 (v5e-safe)
    pooled = jnp.dot(pool_ref[...], h, preferred_element_type=f32)         # (B_PAD, VIS_W) mean-pool
    img_feat = jnp.dot(pooled.astype(bf16), vproj_ref[...],
                       preferred_element_type=f32)                         # (B_PAD, EMBED)

    # ---- text branch: embed(+pos) -> residual MLP -> EOT pool -> proj ----
    x = temb_ref[...]                                                      # (N_CLS*SEQ, TXT_W)
    hh = jax.nn.gelu(jnp.dot(x.astype(bf16), w1_ref[...],
                             preferred_element_type=f32) + b1_ref[...])    # hidden stays in VMEM
    x = x + jnp.dot(hh.astype(bf16), w2_ref[...],
                    preferred_element_type=f32) + b2_ref[...]
    pooled_t = jnp.dot(sel_ref[...], x, preferred_element_type=f32)        # (N_PAD, TXT_W) EOT pool
    txt_feat = jnp.dot(pooled_t.astype(bf16), tproj_ref[...],
                       preferred_element_type=f32)                         # (N_PAD, EMBED)

    # ---- normalize (+ logit_scale folded into image side) -> logits slab ----
    eps = jnp.float32(1e-12)
    scale = jnp.exp(scale_ref[0])
    imgn = img_feat * (scale * jax.lax.rsqrt(
        jnp.maximum(jnp.sum(img_feat * img_feat, -1, keepdims=True), eps)))
    txtn = txt_feat * jax.lax.rsqrt(
        jnp.maximum(jnp.sum(txt_feat * txt_feat, -1, keepdims=True), eps))
    out_ref[...] = jax.lax.dot_general(imgn, txtn, (((1,), (1,)), ((), ())),
                                       preferred_element_type=f32)         # (B_PAD, N_PAD)


# ---------------- JAX glue (layout plumbing only) ----------------
def _patchify(x):
    """(N, C, H, W) -> (N*nh*nw, C*P*P), zero-padded to KP columns."""
    N, Cn, H, W = x.shape
    nh, nw = H // PATCH, W // PATCH
    x = x.reshape(N, Cn, nh, PATCH, nw, PATCH)
    x = x.transpose(0, 2, 4, 1, 3, 5).reshape(N * nh * nw, Cn * PATCH * PATCH)
    return jnp.pad(x, ((0, 0), (0, KP - KP_RAW)))


def build_pad_prompt(p):
    """Reconstruct the full (1,C,H,W) prompt from PadPrompter pads (zeros in the center)."""
    base = IMSIZE - 2 * PAD
    center = jnp.concatenate(
        [p["pad_left"], jnp.zeros((1, C, base, base), jnp.float32), p["pad_right"]], axis=3)
    return jnp.concatenate([p["pad_up"], center, p["pad_down"]], axis=2)


def custom_clip_forward(image, params, tokenized_prompts):
    # --- text encoder front-end: embedding gather + positional (glue) ---
    temb = jnp.take(params["tok_emb"], tokenized_prompts, axis=0) + params["txt_pos"][None]
    temb = temb.reshape(N_CLS * SEQ, TXT_W)
    # EOT pooling as a one-hot selection matmul, pre-padded to the output slab rows
    eot_idx = tokenized_prompts.argmax(axis=-1)
    sel = jax.nn.one_hot(jnp.arange(N_CLS) * SEQ + eot_idx, N_CLS * SEQ, dtype=jnp.float32)
    sel = jnp.pad(sel, ((0, N_PAD - N_CLS), (0, 0)))                       # (N_PAD, N_CLS*SEQ)

    # --- prompter + visual front-end: patchify image and (1,C,H,W) prompt once ---
    img_patches = _patchify(image)                                         # (B*NP, KP)
    prm_patches = _patchify(build_pad_prompt(params))                      # (NP, KP)
    # mean-pool as a matmul, pre-padded to the output slab rows
    pool_mat = jnp.repeat(jnp.eye(B, dtype=jnp.float32), NPATCH, axis=1) / NPATCH
    pool_mat = jnp.pad(pool_mat, ((0, B_PAD - B), (0, 0)))                 # (B_PAD, B*NP)

    out_pad = pl.pallas_call(
        _fused_clip_kernel,
        out_shape=jax.ShapeDtypeStruct((B_PAD, N_PAD), jnp.float32),
        in_specs=[
            pl.BlockSpec(memory_space=pltpu.MemorySpace.SMEM),        # logit_scale
            pl.BlockSpec((B * NPATCH, KP), lambda: (0, 0)),           # image patches
            pl.BlockSpec((NPATCH, KP), lambda: (0, 0)),               # prompt patches (1 copy)
            pl.BlockSpec((KP, VIS_W), lambda: (0, 0)),                # patch_w (bf16)
            pl.BlockSpec((1, VIS_W), lambda: (0, 0)),                 # patch_b
            pl.BlockSpec((NPATCH, VIS_W), lambda: (0, 0)),            # vis_pos
            pl.BlockSpec((B_PAD, B * NPATCH), lambda: (0, 0)),        # pooling matrix (padded)
            pl.BlockSpec((VIS_W, EMBED), lambda: (0, 0)),             # vis_proj (bf16)
            pl.BlockSpec((N_CLS * SEQ, TXT_W), lambda: (0, 0)),       # text embeddings
            pl.BlockSpec((TXT_W, 4 * TXT_W), lambda: (0, 0)),         # mlp_w1 (bf16)
            pl.BlockSpec((1, 4 * TXT_W), lambda: (0, 0)),             # mlp_b1
            pl.BlockSpec((4 * TXT_W, TXT_W), lambda: (0, 0)),         # mlp_w2 (bf16)
            pl.BlockSpec((1, TXT_W), lambda: (0, 0)),                 # mlp_b2
            pl.BlockSpec((TXT_W, EMBED), lambda: (0, 0)),             # txt_proj (bf16)
            pl.BlockSpec((N_PAD, N_CLS * SEQ), lambda: (0, 0)),       # EOT one-hot (padded)
        ],
        out_specs=pl.BlockSpec((B_PAD, N_PAD), lambda: (0, 0)),
    )(params["logit_scale"], img_patches, prm_patches,
      params["patch_w"], params["patch_b"], params["vis_pos"], pool_mat, params["vis_proj"],
      temb, params["mlp_w1"], params["mlp_b1"], params["mlp_w2"], params["mlp_b2"],
      params["txt_proj"], sel)

    return out_pad[:B, :N_CLS]


# ---------------- parameter / prompt construction ----------------
def init_params(key):
    ks = jax.random.split(key, 12)
    p = {}
    # PadPrompter learnable pads (same shapes as the PyTorch PadPrompter)
    base = IMSIZE - 2 * PAD
    p["pad_up"]    = 0.1 * jax.random.normal(ks[0], (1, C, PAD, IMSIZE), jnp.float32)
    p["pad_down"]  = 0.1 * jax.random.normal(ks[1], (1, C, PAD, IMSIZE), jnp.float32)
    p["pad_left"]  = 0.1 * jax.random.normal(ks[2], (1, C, base, PAD), jnp.float32)
    p["pad_right"] = 0.1 * jax.random.normal(ks[3], (1, C, base, PAD), jnp.float32)
    # visual encoder (matmul weights stored bf16; K dim zero-padded 192 -> 256)
    pw = 0.02 * jax.random.normal(ks[4], (KP_RAW, VIS_W), jnp.float32)
    p["patch_w"]  = jnp.pad(pw, ((0, KP - KP_RAW), (0, 0))).astype(jnp.bfloat16)
    p["patch_b"]  = jnp.zeros((1, VIS_W), jnp.float32)
    p["vis_pos"]  = 0.02 * jax.random.normal(ks[5], (NPATCH, VIS_W), jnp.float32)
    p["vis_proj"] = (0.02 * jax.random.normal(ks[6], (VIS_W, EMBED), jnp.float32)).astype(jnp.bfloat16)
    # text encoder
    p["tok_emb"]  = 0.02 * jax.random.normal(ks[7], (VOCAB, TXT_W), jnp.float32)
    p["txt_pos"]  = 0.02 * jax.random.normal(ks[8], (SEQ, TXT_W), jnp.float32)
    p["mlp_w1"]   = (0.02 * jax.random.normal(ks[9], (TXT_W, 4 * TXT_W), jnp.float32)).astype(jnp.bfloat16)
    p["mlp_b1"]   = jnp.zeros((1, 4 * TXT_W), jnp.float32)
    p["mlp_w2"]   = (0.02 * jax.random.normal(ks[10], (4 * TXT_W, TXT_W), jnp.float32)).astype(jnp.bfloat16)
    p["mlp_b2"]   = jnp.zeros((1, TXT_W), jnp.float32)
    p["txt_proj"] = (0.02 * jax.random.normal(ks[11], (TXT_W, EMBED), jnp.float32)).astype(jnp.bfloat16)
    # CLIP logit scale (same init as CLIP: ln(1/0.07))
    p["logit_scale"] = jnp.array([np.log(1.0 / 0.07)], dtype=jnp.float32)
    return p


def build_tokenized_prompts():
    """Deterministic toy tokenization of 'X X X X <classname> .' prompts."""
    toks = np.zeros((N_CLS, SEQ), dtype=np.int32)
    for i in range(N_CLS):
        seq = [1] + [5, 6, 7, 8][:N_CTX] + [10 + i, 2, VOCAB - 1]   # SOT, ctx, name, '.', EOT
        toks[i, :len(seq)] = seq
    return jnp.asarray(toks)


if __name__ == "__main__":
    key = jax.random.PRNGKey(0)
    kimg, kparam = jax.random.split(key)
    image = jax.random.normal(kimg, (B, C, IMSIZE, IMSIZE), jnp.float32)
    params = init_params(kparam)
    tokenized_prompts = build_tokenized_prompts()

    forward = jax.jit(custom_clip_forward)
    logits = forward(image, params, tokenized_prompts)
    jax.block_until_ready(logits)
    assert logits.shape == (B, N_CLS), logits.shape
    assert bool(jnp.all(jnp.isfinite(logits)))
    print("KERNEL_OK")
</pallas_src>

<mosaic_0001>
module attributes {stable_mosaic.version = 11 : i64} {
  func.func @_fused_clip_kernel(%arg0: memref<1xf32, #tpu.memory_space<smem>>, %arg1: memref<32x256xf32, #tpu.memory_space<vmem>>, %arg2: memref<16x256xf32, #tpu.memory_space<vmem>>, %arg3: memref<256x128xbf16, #tpu.memory_space<vmem>>, %arg4: memref<1x128xf32, #tpu.memory_space<vmem>>, %arg5: memref<16x128xf32, #tpu.memory_space<vmem>>, %arg6: memref<8x32xf32, #tpu.memory_space<vmem>>, %arg7: memref<128x128xbf16, #tpu.memory_space<vmem>>, %arg8: memref<64x128xf32, #tpu.memory_space<vmem>>, %arg9: memref<128x512xbf16, #tpu.memory_space<vmem>>, %arg10: memref<1x512xf32, #tpu.memory_space<vmem>>, %arg11: memref<512x128xbf16, #tpu.memory_space<vmem>>, %arg12: memref<1x128xf32, #tpu.memory_space<vmem>>, %arg13: memref<128x128xbf16, #tpu.memory_space<vmem>>, %arg14: memref<128x64xf32, #tpu.memory_space<vmem>>, %arg15: memref<8x128xf32, #tpu.memory_space<vmem>>) attributes {dimension_semantics = [], scalar_prefetch = 0 : i64, scratch_operands = 0 : i64, tpu.core_type = #tpu.core_type<tc>} {
    %c0 = arith.constant 0 : index
    %c0_0 = arith.constant 0 : index
    %0 = vector.load %arg1[%c0, %c0_0] : memref<32x256xf32, #tpu.memory_space<vmem>>, vector<32x256xf32>
    %c0_1 = arith.constant 0 : index
    %c0_2 = arith.constant 0 : index
    %1 = vector.load %arg2[%c0_1, %c0_2] : memref<16x256xf32, #tpu.memory_space<vmem>>, vector<16x256xf32>
    %2 = tpu.concatenate %1, %1 in 0 : vector<16x256xf32>, vector<16x256xf32> -> vector<32x256xf32>
    %3 = arith.addf %0, %2 : vector<32x256xf32>
    %4 = arith.truncf %3 : vector<32x256xf32> to vector<32x256xbf16>
    %c0_3 = arith.constant 0 : index
    %c0_4 = arith.constant 0 : index
    %5 = vector.load %arg3[%c0_3, %c0_4] : memref<256x128xbf16, #tpu.memory_space<vmem>>, vector<256x128xbf16>
    %cst = arith.constant dense<0.000000e+00> : vector<32x128xf32>
    %6 = tpu.matmul %4, %5, %cst {dimension_numbers = #tpu.dot_dimension_numbers<[1], [0], [0], [1], [0, 0, 1, 1], [], []>} : vector<32x256xbf16>, vector<256x128xbf16>, vector<32x128xf32> -> vector<32x128xf32>
    %c0_5 = arith.constant 0 : index
    %c0_6 = arith.constant 0 : index
    %7 = vector.load %arg5[%c0_5, %c0_6] : memref<16x128xf32, #tpu.memory_space<vmem>>, vector<16x128xf32>
    %8 = tpu.concatenate %7, %7 in 0 : vector<16x128xf32>, vector<16x128xf32> -> vector<32x128xf32>
    %9 = arith.addf %6, %8 : vector<32x128xf32>
    %c0_7 = arith.constant 0 : index
    %c0_8 = arith.constant 0 : index
    %10 = vector.load %arg4[%c0_7, %c0_8] : memref<1x128xf32, #tpu.memory_space<vmem>>, vector<1x128xf32>
    %11 = vector.broadcast %10 : vector<1x128xf32> to vector<32x128xf32>
    %12 = arith.addf %9, %11 : vector<32x128xf32>
    %13 = arith.mulf %12, %12 : vector<32x128xf32>
    %14 = arith.mulf %12, %13 : vector<32x128xf32>
    %cst_9 = arith.constant 4.471500e-02 : f32
    %15 = vector.broadcast %cst_9 : f32 to vector<32x128xf32>
    %16 = arith.mulf %15, %14 : vector<32x128xf32>
    %17 = arith.addf %12, %16 : vector<32x128xf32>
    %cst_10 = arith.constant 0.797884583 : f32
    %18 = vector.broadcast %cst_10 : f32 to vector<32x128xf32>
    %19 = arith.mulf %18, %17 : vector<32x128xf32>
    %20 = math.tanh %19 : vector<32x128xf32>
    %cst_11 = arith.constant 1.000000e+00 : f32
    %21 = vector.broadcast %cst_11 : f32 to vector<32x128xf32>
    %22 = arith.addf %21, %20 : vector<32x128xf32>
    %cst_12 = arith.constant 5.000000e-01 : f32
    %23 = vector.broadcast %cst_12 : f32 to vector<32x128xf32>
    %24 = arith.mulf %23, %22 : vector<32x128xf32>
    %25 = arith.mulf %12, %24 : vector<32x128xf32>
    %c0_13 = arith.constant 0 : index
    %c0_14 = arith.constant 0 : index
    %26 = vector.load %arg6[%c0_13, %c0_14] : memref<8x32xf32, #tpu.memory_space<vmem>>, vector<8x32xf32>
    %cst_15 = arith.constant dense<0.000000e+00> : vector<8x128xf32>
    %27 = tpu.matmul %26, %25, %cst_15 {dimension_numbers = #tpu.dot_dimension_numbers<[1], [0], [0], [1], [0, 0, 1, 1], [], []>} : vector<8x32xf32>, vector<32x128xf32>, vector<8x128xf32> -> vector<8x128xf32>
    %28 = arith.truncf %27 : vector<8x128xf32> to vector<8x128xbf16>
    %c0_16 = arith.constant 0 : index
    %c0_17 = arith.constant 0 : index
    %29 = vector.load %arg7[%c0_16, %c0_17] : memref<128x128xbf16, #tpu.memory_space<vmem>>, vector<128x128xbf16>
    %cst_18 = arith.constant dense<0.000000e+00> : vector<8x128xf32>
    %30 = tpu.matmul %28, %29, %cst_18 {dimension_numbers = #tpu.dot_dimension_numbers<[1], [0], [0], [1], [0, 0, 1, 1], [], []>} : vector<8x128xbf16>, vector<128x128xbf16>, vector<8x128xf32> -> vector<8x128xf32>
    %c0_19 = arith.constant 0 : index
    %c0_20 = arith.constant 0 : index
    %31 = vector.load %arg8[%c0_19, %c0_20] : memref<64x128xf32, #tpu.memory_space<vmem>>, vector<64x128xf32>
    %32 = arith.truncf %31 : vector<64x128xf32> to vector<64x128xbf16>
    %c0_21 = arith.constant 0 : index
    %c0_22 = arith.constant 0 : index
    %33 = vector.load %arg9[%c0_21, %c0_22] : memref<128x512xbf16, #tpu.memory_space<vmem>>, vector<128x512xbf16>
    %cst_23 = arith.constant dense<0.000000e+00> : vector<64x512xf32>
    %34 = tpu.matmul %32, %33, %cst_23 {dimension_numbers = #tpu.dot_dimension_numbers<[1], [0], [0], [1], [0, 0, 1, 1], [], []>} : vector<64x128xbf16>, vector<128x512xbf16>, vector<64x512xf32> -> vector<64x512xf32>
    %c0_24 = arith.constant 0 : index
    %c0_25 = arith.constant 0 : index
    %35 = vector.load %arg10[%c0_24, %c0_25] : memref<1x512xf32, #tpu.memory_space<vmem>>, vector<1x512xf32>
    %36 = vector.broadcast %35 : vector<1x512xf32> to vector<64x512xf32>
    %37 = arith.addf %34, %36 : vector<64x512xf32>
    %38 = arith.mulf %37, %37 : vector<64x512xf32>
    %39 = arith.mulf %37, %38 : vector<64x512xf32>
    %cst_26 = arith.constant 4.471500e-02 : f32
    %40 = vector.broadcast %cst_26 : f32 to vector<64x512xf32>
    %41 = arith.mulf %40, %39 : vector<64x512xf32>
    %42 = arith.addf %37, %41 : vector<64x512xf32>
    %cst_27 = arith.constant 0.797884583 : f32
    %43 = vector.broadcast %cst_27 : f32 to vector<64x512xf32>
    %44 = arith.mulf %43, %42 : vector<64x512xf32>
    %45 = math.tanh %44 : vector<64x512xf32>
    %cst_28 = arith.constant 1.000000e+00 : f32
    %46 = vector.broadcast %cst_28 : f32 to vector<64x512xf32>
    %47 = arith.addf %46, %45 : vector<64x512xf32>
    %cst_29 = arith.constant 5.000000e-01 : f32
    %48 = vector.broadcast %cst_29 : f32 to vector<64x512xf32>
    %49 = arith.mulf %48, %47 : vector<64x512xf32>
    %50 = arith.mulf %37, %49 : vector<64x512xf32>
    %51 = arith.truncf %50 : vector<64x512xf32> to vector<64x512xbf16>
    %c0_30 = arith.constant 0 : index
    %c0_31 = arith.constant 0 : index
    %52 = vector.load %arg11[%c0_30, %c0_31] : memref<512x128xbf16, #tpu.memory_space<vmem>>, vector<512x128xbf16>
    %cst_32 = arith.constant dense<0.000000e+00> : vector<64x128xf32>
    %53 = tpu.matmul %51, %52, %cst_32 {dimension_numbers = #tpu.dot_dimension_numbers<[1], [0], [0], [1], [0, 0, 1, 1], [], []>} : vector<64x512xbf16>, vector<512x128xbf16>, vector<64x128xf32> -> vector<64x128xf32>
    %54 = arith.addf %31, %53 : vector<64x128xf32>
    %c0_33 = arith.constant 0 : index
    %c0_34 = arith.constant 0 : index
    %55 = vector.load %arg12[%c0_33, %c0_34] : memref<1x128xf32, #tpu.memory_space<vmem>>, vector<1x128xf32>
    %56 = vector.broadcast %55 : vector<1x128xf32> to vector<64x128xf32>
    %57 = arith.addf %54, %56 : vector<64x128xf32>
    %c0_35 = arith.constant 0 : index
    %c0_36 = arith.constant 0 : index
    %58 = vector.load %arg14[%c0_35, %c0_36] : memref<128x64xf32, #tpu.memory_space<vmem>>, vector<128x64xf32>
    %cst_37 = arith.constant dense<0.000000e+00> : vector<128x128xf32>
    %59 = tpu.matmul %58, %57, %cst_37 {dimension_numbers = #tpu.dot_dimension_numbers<[1], [0], [0], [1], [0, 0, 1, 1], [], []>} : vector<128x64xf32>, vector<64x128xf32>, vector<128x128xf32> -> vector<128x128xf32>
    %60 = arith.truncf %59 : vector<128x128xf32> to vector<128x128xbf16>
    %c0_38 = arith.constant 0 : index
    %c0_39 = arith.constant 0 : index
    %61 = vector.load %arg13[%c0_38, %c0_39] : memref<128x128xbf16, #tpu.memory_space<vmem>>, vector<128x128xbf16>
    %cst_40 = arith.constant dense<0.000000e+00> : vector<128x128xf32>
    %62 = tpu.matmul %60, %61, %cst_40 {dimension_numbers = #tpu.dot_dimension_numbers<[1], [0], [0], [1], [0, 0, 1, 1], [], []>} : vector<128x128xbf16>, vector<128x128xbf16>, vector<128x128xf32> -> vector<128x128xf32>
    %c0_41 = arith.constant 0 : index
    %63 = memref.load %arg0[%c0_41] : memref<1xf32, #tpu.memory_space<smem>>
    %64 = math.exp %63 : f32
    %65 = arith.mulf %30, %30 : vector<8x128xf32>
    %cst_42 = arith.constant dense<0.000000e+00> : vector<8xf32>
    %66 = vector.multi_reduction <add>, %65, %cst_42 [1] : vector<8x128xf32> to vector<8xf32>
    %67 = vector.shape_cast %66 : vector<8xf32> to vector<8x1xf32>
    %cst_43 = arith.constant 9.99999996E-13 : f32
    %68 = vector.broadcast %cst_43 : f32 to vector<8x1xf32>
    %69 = arith.maximumf %67, %68 : vector<8x1xf32>
    %70 = math.rsqrt %69 : vector<8x1xf32>
    %71 = vector.broadcast %64 : f32 to vector<8x1xf32>
    %72 = arith.mulf %71, %70 : vector<8x1xf32>
    %73 = vector.broadcast %72 : vector<8x1xf32> to vector<8x128xf32>
    %74 = arith.mulf %30, %73 : vector<8x128xf32>
    %75 = arith.mulf %62, %62 : vector<128x128xf32>
    %cst_44 = arith.constant dense<0.000000e+00> : vector<128xf32>
    %76 = vector.multi_reduction <add>, %75, %cst_44 [1] : vector<128x128xf32> to vector<128xf32>
    %77 = vector.shape_cast %76 : vector<128xf32> to vector<128x1xf32>
    %cst_45 = arith.constant 9.99999996E-13 : f32
    %78 = vector.broadcast %cst_45 : f32 to vector<128x1xf32>
    %79 = arith.maximumf %77, %78 : vector<128x1xf32>
    %80 = math.rsqrt %79 : vector<128x1xf32>
    %81 = vector.broadcast %80 : vector<128x1xf32> to vector<128x128xf32>
    %82 = arith.mulf %62, %81 : vector<128x128xf32>
    %cst_46 = arith.constant dense<0.000000e+00> : vector<8x128xf32>
    %83 = tpu.matmul %74, %82, %cst_46 {dimension_numbers = #tpu.dot_dimension_numbers<[1], [1], [0], [0], [0, 0, 1, 0], [], []>} : vector<8x128xf32>, vector<128x128xf32>, vector<8x128xf32> -> vector<8x128xf32>
    %c0_47 = arith.constant 0 : index
    %c0_48 = arith.constant 0 : index
    %84 = vector.load %arg15[%c0_47, %c0_48] : memref<8x128xf32, #tpu.memory_space<vmem>>, vector<8x128xf32>
    tpu.vector_store %arg15[%c0_47, %c0_48], %83 {strides = array<i32>} : memref<8x128xf32, #tpu.memory_space<vmem>>, vector<8x128xf32>,
    return
  }
}

</mosaic_0001>

<bundles_post_ra>
// kernel: custom_clip_forward.1
= control target key start
LH: loop header
LB: loop body
LE: loop exit
PB: predicated region body
PF: predicated region fallthrough
CT: control target
= control target key end

     0   :  { %v2795_v40 = vmov 0.0   ;;  %vm2796_vm0 = vmmov 0   ;;  %v2797_v54 = vmov 0   ;;  %vm303_vm1 = vcmask 261120   ;;  %s3758_s3 = inlined_call_operand.vmem [shape: bf16[256,128], index: 3, kind: input, shape index: {}]   ;;  %s3759_s1 = inlined_call_operand.vmem [shape: f32[32,256], index: 1, kind: input, shape index: {}]   ;;  %s3760_s2 = inlined_call_operand.vmem [shape: f32[16,256], index: 2, kind: input, shape index: {}]   ;;  %s3761_s9 = inlined_call_operand.vmem [shape: bf16[128,512], index: 9, kind: input, shape index: {}]   ;;  %s3762_s7 = inlined_call_operand.vmem [shape: bf16[128,128], index: 7, kind: input, shape index: {}]   ;;  %s3763_s8 = inlined_call_operand.vmem [shape: f32[64,128], index: 8, kind: input, shape index: {}]   ;;  %s3764_s5 = inlined_call_operand.vmem [shape: f32[16,128], index: 5, kind: input, shape index: {}]   ;;  %s3765_s4 = inlined_call_operand.vmem [shape: f32[1,128], index: 4, kind: input, shape index: {}]   ;;  %s3766_s6 = inlined_call_operand.vmem [shape: f32[8,32], index: 6, kind: input, shape index: {}]   ;;  %s3767_s10 = inlined_call_operand.vmem [shape: f32[1,512], index: 10, kind: input, shape index: {}]   ;;  %s3768_s11 = inlined_call_operand.vmem [shape: bf16[512,128], index: 11, kind: input, shape index: {}]   ;;  %s3769_s14 = inlined_call_operand.vmem [shape: f32[128,64], index: 14, kind: input, shape index: {}]   ;;  %s3770_s13 = inlined_call_operand.vmem [shape: bf16[128,128], index: 13, kind: input, shape index: {}]   ;;  %s3771_s12 = inlined_call_operand.vmem [shape: f32[1,128], index: 12, kind: input, shape index: {}]   ;;  %s3772_s0 = inlined_call_operand.<no memory space> [shape: f32[1], index: 0, kind: input, shape index: {}]   ;;  %s3773_s15 = inlined_call_operand.vmem [shape: f32[8,128], index: 15, kind: output, shape index: {}]  }
   0x1   :  { %v2567_v0 = vld [vmem:[%s3758_s3 + $0x78] sm:$0xff]   ;;  %v2569_v2 = vld [vmem:[%s3758_s3 + $0x70] sm:$0xff]   ;;  %v2571_v4 = vld [vmem:[%s3758_s3 + $0x68] sm:$0xff]   ;;  %2424 = vmatprep.subr.mxu1 %v2795_v40  ;;  %2432 = vmatprep.mubr.msk.f32.mxu1 %vm2796_vm0, %v2795_v40  ;;  %vm1583_vm2 = vcmask 523264  }
   0x2   :  { %v2568_v1 = vld [vmem:[%s3758_s3 + $0x38] sm:$0xff]   ;;  %2245 = vmatprep.subr.bf16.mxu0 %v2567_v0  ;;  %v2570_v3 = vld [vmem:[%s3758_s3 + $0x30] sm:$0xff]   ;;  %v2572_v5 = vld [vmem:[%s3758_s3 + $0x28] sm:$0xff]  }
   0x3   :  { %2246 = vmatpush3.bf16.msra.mxu0 %v2568_v1  ;;  %v2573_v6 = vld [vmem:[%s3758_s3 + $0x60] sm:$0xff]   ;;  %v2575_v8 = vld [vmem:[%s3758_s3 + $0x58] sm:$0xff]   ;;  %v2577_v10 = vld [vmem:[%s3758_s3 + $0x50] sm:$0xff]  }
   0x4   :  { %2247 = vmatprep.subr.bf16.mxu0 %v2569_v2  ;;  %v2574_v7 = vld [vmem:[%s3758_s3 + $0x20] sm:$0xff]   ;;  %v2576_v9 = vld [vmem:[%s3758_s3 + $0x18] sm:$0xff]   ;;  %v53_v11 = vld [vmem:[%s3759_s1 + $0x8] sm:$0xff] }
   0x5   :  { %v55_v12 = vld [vmem:[%s3759_s1 + $0x18] sm:$0xff]  ;;  %v61_v13 = vld [vmem:[%s3760_s2 + $0x8] sm:$0xff]  ;;  %v2578_v17 = vld [vmem:[%s3758_s3 + $0x10] sm:$0xff]  }
   0x6   :  { %v63_v14 = vld [vmem:[%s3760_s2 + $0x18] sm:$0xff]  ;;  %v65_v15 = vadd.f32 %v61_v13, %v53_v11  ;;  %v2579_v18 = vld [vmem:[%s3758_s3 + $0x48] sm:$0xff]   ;;  %v52_v21 = vld [vmem:[%s3759_s1] sm:$0xff] }
   0x7   :  { %2248 = vmatpush3.bf16.msra.mxu0 %v2570_v3  ;;  %v67_v16 = vadd.f32 %v63_v14, %v55_v12  ;;  %v2580_v20 = vld [vmem:[%s3758_s3 + $0x8] sm:$0xff]   ;;  %v54_v22 = vld [vmem:[%s3759_s1 + $0x10] sm:$0xff]  ;;  %v60_v23 = vld [vmem:[%s3760_s2] sm:$0xff] }
   0x8   :  { %2249 = vmatprep.subr.bf16.mxu0 %v2571_v4  ;;  %v62_v24 = vld [vmem:[%s3760_s2 + $0x10] sm:$0xff]  ;;  %v2581_v25 = vld [vmem:[%s3758_s3 + $0x40] sm:$0xff]   ;;  %v57_v26 = vld [vmem:[%s3759_s1 + $0x28] sm:$0xff]  ;;  %v64_v28 = vadd.f32 %v60_v23, %v52_v21 }
   0x9   :  { %v73_v19 = vpack.c.bf16 %v67_v16, %v65_v15  ;;  %v59_v27 = vld [vmem:[%s3759_s1 + $0x38] sm:$0xff]  ;;  %v66_v29 = vadd.f32 %v62_v24, %v54_v22  ;;  %v2582_v30 = vld [vmem:[%s3758_s3] sm:$0xff]   ;;  %v69_v31 = vadd.f32 %v61_v13, %v57_v26  ;;  %v58_v36 = vld [vmem:[%s3759_s1 + $0x30] sm:$0xff] }
   0xa   :  { %v71_v32 = vadd.f32 %v63_v14, %v59_v27  ;;  %v56_v35 = vld [vmem:[%s3759_s1 + $0x20] sm:$0xff]  ;;  %v70_v38 = vadd.f32 %v62_v24, %v58_v36  ;;  %v483_v59 = vld [vmem:[%s3763_s8 + $0x8] sm:$0xff] }
   0xb   :  { %2250 = vmatpush3.bf16.msra.mxu0 %v2572_v5  ;;  %238 = vmatprep.mubr.bf16.mxu0 %v73_v19  ;;  %v72_v33 = vpack.c.bf16 %v66_v29, %v64_v28  ;;  %v68_v37 = vadd.f32 %v60_v23, %v56_v35  ;;  %v2583_v41 = vld [vmem:[%s3761_s9 + $0xe0] ss:$16 sps:$4 sm:$0xff]   ;;  %v2585_v42 = vld [vmem:[%s3761_s9 + $0xe4] ss:$16 sps:$4 sm:$0xff]   ;;  %v109_v4 = vld [vmem:[%s3764_s5 + $0x8] sm:$0xff] }
   0xc   :  { %2251 = vmatprep.subr.bf16.mxu0 %v2573_v6  ;;  %v75_v34 = vpack.c.bf16 %v71_v32, %v69_v31  ;;  %v2588_v43 = vld [vmem:[%s3761_s9 + $0xc4] ss:$16 sps:$4 sm:$0xff]   ;;  %v2586_v44 = vld [vmem:[%s3761_s9 + $0xc0] ss:$16 sps:$4 sm:$0xff]  }
   0xd   :  { %v74_v39 = vpack.c.bf16 %v70_v38, %v68_v37  ;;  %v2591_v45 = vld [vmem:[%s3761_s9 + $0xa4] ss:$16 sps:$4 sm:$0xff]   ;;  %v2589_v46 = vld [vmem:[%s3761_s9 + $0xa0] ss:$16 sps:$4 sm:$0xff]  }
   0xe   :  { %v2595_v47 = vld [vmem:[%s3761_s9 + $0x84] ss:$16 sps:$4 sm:$0xff]   ;;  %v2593_v48 = vld [vmem:[%s3761_s9 + $0x80] ss:$16 sps:$4 sm:$0xff]  }
   0xf   :  { %2252 = vmatpush3.bf16.msra.mxu0 %v2574_v7  ;;  %v2599_v49 = vld [vmem:[%s3761_s9 + $0x64] ss:$16 sps:$4 sm:$0xff]   ;;  %v2597_v50 = vld [vmem:[%s3761_s9 + $0x60] ss:$16 sps:$4 sm:$0xff]  }
  0x10   :  { %2253 = vmatprep.subr.bf16.mxu0 %v2575_v8  ;;  %v2603_v51 = vld [vmem:[%s3761_s9 + $0x44] ss:$16 sps:$4 sm:$0xff]   ;;  %v2601_v52 = vld [vmem:[%s3761_s9 + $0x40] ss:$16 sps:$4 sm:$0xff]  }
  0x11   :  { %v2607_v53 = vld [vmem:[%s3761_s9 + $0x24] ss:$16 sps:$4 sm:$0xff]   ;;  %v2605_v55 = vld [vmem:[%s3761_s9 + $0x20] ss:$16 sps:$4 sm:$0xff]  }
  0x12   :  { %v2611_v56 = vld [vmem:[%s3761_s9 + $0x4] ss:$16 sps:$4 sm:$0xff]   ;;  %v2609_v57 = vld [vmem:[%s3761_s9] ss:$16 sps:$4 sm:$0xff]  }
  0x13   :  { %2254 = vmatpush3.bf16.msra.mxu0 %v2576_v9  ;;  %v482_v58 = vld [vmem:[%s3763_s8] sm:$0xff] }
  0x14   :  { %2255 = vmatprep.subr.bf16.mxu0 %v2577_v10  ;;  %v3020_v60 = vpack.c.bf16 %v483_v59, %v482_v58  ;;  %v108_v62 = vld [vmem:[%s3764_s5] sm:$0xff]  ;;  %v2592_v59 = vld [vmem:[%s3762_s7 + $0x38] sm:$0xff]  }
  0x15   :  { %v2146_v1 = vld [vmem:[%s3765_s4] ss:$0 sm:$0xff] }
  0x16   :  { %v302_v58 = vld [vmem:[%s3766_s6] sm:$0xff] }
  0x17   :  { %2256 = vmatpush3.bf16.msra.mxu0 %v2578_v17 }
  0x18   :  { %2257 = vmatprep.subr.bf16.mxu0 %v2579_v18 }
  0x1b   :  { %2258 = vmatpush3.bf16.msra.mxu0 %v2580_v20 }
  0x1c   :  { %2259 = vmatprep.subr.bf16.mxu0 %v2581_v25 }
  0x1f   :  { %2260 = vmatpush3.bf16.msra.mxu0 %v2582_v30 }
  0x20   :  { %708 = vmatprep.subr.bf16.mxu0 %v2585_v42 }
  0x22   :  { %239 = vmatmul.mubr.bf16.vlgmr.msra.gmra.mxu0 %v72_v33 }
  0x23   :  { %246 = vmatprep.mubr.bf16.mxu0 %v75_v34  ;;  %709 = vmatpush1.bf16.msra.mxu0 %v2583_v41 }
  0x24   :  { %710 = vmatprep.subr.bf16.mxu0 %v2588_v43 }
  0x27   :  { %711 = vmatpush1.bf16.msra.mxu0 %v2586_v44 }
  0x28   :  { %712 = vmatprep.subr.bf16.mxu0 %v2591_v45 }
  0x2a   :  { %247 = vmatmul.mubr.bf16.gmra.mxu0 %v74_v39 }
  0x2b   :  { %713 = vmatpush1.bf16.msra.mxu0 %v2589_v46  ;;  %740 = vmatprep.mubr.bf16.mxu0 %v2797_v54 }
  0x2c   :  { %714 = vmatprep.subr.bf16.mxu0 %v2595_v47 }
  0x2f   :  { %715 = vmatpush1.bf16.msra.mxu0 %v2593_v48 }
  0x30   :  { %716 = vmatprep.subr.bf16.mxu0 %v2599_v49 }
  0x33   :  { %717 = vmatpush1.bf16.msra.mxu0 %v2597_v50 }
  0x34   :  { %718 = vmatprep.subr.bf16.mxu0 %v2603_v51 }
  0x37   :  { %719 = vmatpush1.bf16.msra.mxu0 %v2601_v52 }
  0x38   :  { %720 = vmatprep.subr.bf16.mxu0 %v2607_v53 }
  0x3b   :  { %721 = vmatpush1.bf16.msra.mxu0 %v2605_v55 }
  0x3c   :  { %722 = vmatprep.subr.bf16.mxu0 %v2611_v56 }
  0x3f   :  { %723 = vmatpush1.bf16.msra.mxu0 %v2609_v57 }
  0x42   :  { %741 = vmatmul.mubr.bf16.vlgmr.msra.gmra.mxu0 %v3020_v60 }
  0x43   :  { %750 = vmatprep.mubr.bf16.mxu0 %v2797_v54 }
  0xe2   :  { %v2261_v61 = vpop.f32.mrf.mxu0 }
  0xe4   :  { %v2262_v63 = vpop.f32.mrf.mxu0 }
  0xe5   :  { %v2263_v0 = vadd.f32 %v2262_v63, %v2261_v61  ;;  %v2596_v61 = vld [vmem:[%s3762_s7 + $0x30] sm:$0xff]   ;;  %v2604_v63 = vld [vmem:[%s3762_s7 + $0x20] sm:$0xff]  }
  0xe6   :  { %v2264_v2 = vpop.f32.mrf.mxu0 }
  0xe7   :  { %v241_v3 = vadd.f32 %v2263_v0, %v108_v62  ;;  %v2608_v0 = vld [vmem:[%s3762_s7 + $0x18] sm:$0xff]  }
  0xe8   :  { %v2265_v5 = vpop.f32.mrf.mxu0 }
  0xe9   :  { %v262_v6 = vadd.f32 %v2146_v1, %v241_v3  ;;  %v2266_v7 = vadd.f32 %v2265_v5, %v2264_v2  ;;  %v2613_v2 = vld [vmem:[%s3762_s7 + $0x8] sm:$0xff]   ;;  %v2614_v3 = vld [vmem:[%s3762_s7] sm:$0xff]   ;;  %v485_v5 = vld [vmem:[%s3763_s8 + $0x18] sm:$0xff] }
  0xea   :  { %v2267_v8 = vpop.f32.mrf.mxu0 }
  0xeb   :  { %v244_v9 = vadd.f32 %v2266_v7, %v109_v4  ;;  %v266_v10 = vmul.f32 %v262_v6, %v262_v6  ;;  %v2617_v7 = vld [vmem:[%s3761_s9 + $0xec] ss:$16 sps:$4 sm:$0xff]  }
  0xec   :  { %v2268_v11 = vpop.f32.mrf.mxu0 }
  0xed   :  { %v263_v12 = vadd.f32 %v2146_v1, %v244_v9  ;;  %v2269_v13 = vadd.f32 %v2268_v11, %v2267_v8  ;;  %v270_v17 = vmul.f32 %v266_v10, %v262_v6  ;;  %v486_v8 = vld [vmem:[%s3763_s8 + $0x20] sm:$0xff]  ;;  %v487_v9 = vld [vmem:[%s3763_s8 + $0x28] sm:$0xff]  ;;  %v488_v11 = vld [vmem:[%s3763_s8 + $0x30] sm:$0xff] }
  0xee   :  { %v2270_v14 = vpop.f32.mrf.mxu0  ;;  %v3092_v10 = vpack.c.bf16 %v487_v9, %v486_v8  ;;  %v2640_v8 = vld [vmem:[%s3768_s11 + $0x38] sm:$0xff]  }
  0xef   :  { %v267_v15 = vmul.f32 %v263_v12, %v263_v12  ;;  %v249_v16 = vadd.f32 %v2269_v13, %v108_v62  ;;  %v274_v25 = vmul.f32 0.044715, %v270_v17  ;;  %v2600_v62 = vld [vmem:[%s3762_s7 + $0x28] sm:$0xff]  }
  0xf0   :  { %v2271_v18 = vpop.f32.mrf.mxu0  ;;  %v2620_v17 = vld [vmem:[%s3761_s9 + $0xcc] ss:$16 sps:$4 sm:$0xff]  }
  0xf1   :  { %v271_v19 = vmul.f32 %v267_v15, %v263_v12  ;;  %v264_v20 = vadd.f32 %v2146_v1, %v249_v16  ;;  %v2272_v21 = vadd.f32 %v2271_v18, %v2270_v14  ;;  %v278_v31 = vadd.f32 %v274_v25, %v262_v6  ;;  %v2615_v15 = vld [vmem:[%s3761_s9 + $0xe8] ss:$16 sps:$4 sm:$0xff]  }
  0xf2   :  { %v2627_v25 = vld [vmem:[%s3761_s9 + $0x68] ss:$16 sps:$4 sm:$0xff]  }
  0xf3   :  { %v268_v22 = vmul.f32 %v264_v20, %v264_v20  ;;  %v252_v23 = vadd.f32 %v2272_v21, %v109_v4  ;;  %v275_v24 = vmul.f32 0.044715, %v271_v19  ;;  %v282_v37 = vmul.f32 0.7978846, %v278_v31  ;;  %v484_v4 = vld [vmem:[%s3763_s8 + $0x10] sm:$0xff] }
  0xf4   :  { %v2618_v19 = vld [vmem:[%s3761_s9 + $0xc8] ss:$16 sps:$4 sm:$0xff]  }
  0xf5   :  { %v272_v26 = vmul.f32 %v268_v22, %v264_v20  ;;  %v265_v27 = vadd.f32 %v2146_v1, %v252_v23  ;;  %v279_v30 = vadd.f32 %v275_v24, %v263_v12  ;;  %v2612_v1 = vld [vmem:[%s3762_s7 + $0x10] sm:$0xff]   ;;  %v2621_v21 = vld [vmem:[%s3761_s9 + $0xa8] ss:$16 sps:$4 sm:$0xff]   ;;  %v2626_v22 = vld [vmem:[%s3761_s9 + $0x8c] ss:$16 sps:$4 sm:$0xff]  }
  0xf6   :  { %v2624_v23 = vld [vmem:[%s3761_s9 + $0x88] ss:$16 sps:$4 sm:$0xff]   ;;  %v2629_v24 = vld [vmem:[%s3761_s9 + $0x6c] ss:$16 sps:$4 sm:$0xff]  }
  0xf7   :  { %v269_v28 = vmul.f32 %v265_v27, %v265_v27  ;;  %v276_v29 = vmul.f32 0.044715, %v272_v26  ;;  %v283_v36 = vmul.f32 0.7978846, %v279_v30  ;;  %v528_v26 = vlaneseq  ;;  %v2635_v30 = vld [vmem:[%s3761_s9 + $0x2c] ss:$16 sps:$4 sm:$0xff]  }
  0xf8   :  { %v2633_v31 = vld [vmem:[%s3761_s9 + $0x28] ss:$16 sps:$4 sm:$0xff]  }
  0xf9   :  { %v273_v32 = vmul.f32 %v269_v28, %v265_v27  ;;  %v280_v33 = vadd.f32 %v276_v29, %v264_v20  ;;  %v2630_v28 = vld [vmem:[%s3761_s9 + $0x48] ss:$16 sps:$4 sm:$0xff]   ;;  %v3139_v29 = vshrl.u32 %v528_v26, 7 }
  0xfa   :  { %v2643_v26 = vld [vmem:[%s3768_s11 + $0x68] sm:$0xff]  }
  0xfb   :  { %v277_v34 = vmul.f32 0.044715, %v273_v32  ;;  %v284_v35 = vmul.f32 0.7978846, %v280_v33  ;;  %v530_v32 = vsub.s32 0, %v3139_v29 }
  0xfd   :  { %v281_v38 = vadd.f32 %v277_v34, %v265_v27  ;;  %2679 = vtanh.f32 %v284_v35  ;;  %v2638_v34 = vld [vmem:[%s3761_s9 + $0xc] ss:$16 sps:$4 sm:$0xff]   ;;  %v3154_v35 = vld [vmem:[%s3767_s10] sm:$0xf] }
  0xfe   :  { %2681 = vtanh.f32 %v283_v36  ;;  %v2636_v36 = vld [vmem:[%s3761_s9 + $0x8] ss:$16 sps:$4 sm:$0xff]  }
  0xff   :  { %v285_v39 = vmul.f32 0.7978846, %v281_v38  ;;  %2683 = vtanh.f32 %v282_v37  ;;  %v3160_v37 = vrot.slane %v3154_v35, %v530_v32 }
 0x101   :  { %2685 = vtanh.f32 %v285_v39 }
 0x102   :  { %v742_v33 = vpop.f32.mrf.mxu0 }
 0x103   :  { %v3163_v39 = vadd.f32 %v742_v33, %v3160_v37 }
 0x104   :  { %v744_v38 = vpop.f32.mrf.mxu0 }
 0x10a   :  { %v2680_v41 = vpop.eup %2679 }
 0x10b   :  { %v2682_v42 = vpop.eup %2681  ;;  %v292_v44 = vadd.f32 1.0, %v2680_v41  ;;  %v746_v41 = vpop.f32.mrf.mxu0 }
 0x10c   :  { %v2684_v43 = vpop.eup %2683  ;;  %v291_v47 = vadd.f32 1.0, %v2682_v42  ;;  %v3166_v42 = vadd.f32 %v746_v41, %v3160_v37 }
 0x10d   :  { %v296_v49 = vmul.f32 0.5, %v292_v44  ;;  %v290_v50 = vadd.f32 1.0, %v2684_v43  ;;  %v854_v43 = vmul.f32 %v3163_v39, %v3163_v39  ;;  %v534_v44 = vsub.s32 1, %v3139_v29 }
 0x10e   :  { %v2686_v45 = vpop.eup %2685  ;;  %v295_v52 = vmul.f32 0.5, %v291_v47 }
 0x10f   :  { %v293_v46 = vadd.f32 1.0, %v2686_v45  ;;  %v300_v53 = vmul.f32 %v296_v49, %v264_v20  ;;  %v294_v55 = vmul.f32 0.5, %v290_v50  ;;  %v2623_v20 = vld [vmem:[%s3761_s9 + $0xac] ss:$16 sps:$4 sm:$0xff]   ;;  %v858_v45 = vmul.f32 %v3166_v42, %v3166_v42  ;;  %v748_v49 = vpop.f32.mrf.mxu0 }
 0x110   :  { %v299_v56 = vmul.f32 %v295_v52, %v263_v12  ;;  %v489_v12 = vld [vmem:[%s3763_s8 + $0x38] sm:$0xff]  ;;  %v3177_v47 = vrot.slane %v3154_v35, %v534_v44 }
 0x111   :  { %v297_v48 = vmul.f32 0.5, %v293_v46  ;;  %v298_v57 = vmul.f32 %v294_v55, %v262_v6  ;;  %v3079_v6 = vpack.c.bf16 %v485_v5, %v484_v4  ;;  %v3102_v13 = vpack.c.bf16 %v489_v12, %v488_v11 }
 0x112   :  { %v886_v46 = vmul.f32 %v854_v43, %v3163_v39  ;;  %v3183_v50 = vadd.f32 %v744_v38, %v3177_v47  ;;  %v3186_v52 = vadd.f32 %v748_v49, %v3177_v47 }
 0x113   :  { %v301_v51 = vmul.f32 %v297_v48, %v265_v27  ;;  %751 = vmatmul.mubr.bf16.gmra.mxu0 %v3079_v6  ;;  %v2632_v27 = vld [vmem:[%s3761_s9 + $0x4c] ss:$16 sps:$4 sm:$0xff]   ;;  %v890_v48 = vmul.f32 %v858_v45, %v3166_v42 }
 0x114   :  { %760 = vmatprep.mubr.bf16.mxu0 %v2797_v54  ;;  %v855_v55 = vmul.f32 %v3183_v50, %v3183_v50 }
 0x115   :  { %2425 = vmatpush3.msra.mxu1 %v301_v51  ;;  %v922_v51 = vmul.f32 0.044715, %v890_v48  ;;  %v2647_v48 = vld [vmem:[%s3768_s11 + $0x58] sm:$0xff]  }
 0x116   :  { %2426 = vmatprep.subr.mxu1 %v2795_v40 }
 0x117   :  { %2427 = vmatpush3.msra.mxu1 %v300_v53 }
 0x118   :  { %2428 = vmatprep.subr.mxu1 %v2795_v40 }
 0x119   :  { %2429 = vmatpush3.msra.mxu1 %v299_v56  ;;  %v954_v56 = vadd.f32 %v922_v51, %v3166_v42 }
 0x11a   :  { %2430 = vmatprep.subr.mxu1 %v2795_v40 }
 0x11b   :  { %2431 = vmatpush3.msra.mxu1 %v298_v57  ;;  %761 = vmatmul.mubr.bf16.gmra.mxu0 %v3092_v10  ;;  %v859_v57 = vmul.f32 %v3186_v52, %v3186_v52 }
 0x11c   :  { %2433 = vmatmul.mubr.msk.f32.vlgmr.msra.gmra.mxu1 %vm303_vm1, %v302_v58  ;;  %2435 = vmatprep.subr.bf16.mxu1 %v2795_v40 }
 0x11d   :  { %2436 = vmatpush3.bf16.msra.mxu1 %v2592_v59  ;;  %2451 = vmatprep.mubr.msk.bf16.mxu1 %vm2796_vm0, %v2795_v40  ;;  %v887_v59 = vmul.f32 %v855_v55, %v3183_v50 }
 0x11e   :  { %2437 = vmatprep.subr.bf16.mxu1 %v2795_v40  ;;  %770 = vmatprep.mubr.bf16.mxu0 %v2797_v54 }
 0x121   :  { %2438 = vmatpush3.bf16.msra.mxu1 %v2596_v61  ;;  %v986_v61 = vmul.f32 0.7978846, %v954_v56 }
 0x122   :  { %2439 = vmatprep.subr.bf16.mxu1 %v2795_v40 }
 0x123   :  { %771 = vmatmul.mubr.bf16.gmra.mxu0 %v3102_v13 }
 0x125   :  { %2440 = vmatpush3.bf16.msra.mxu1 %v2600_v62  ;;  %v891_v62 = vmul.f32 %v859_v57, %v3186_v52 }
 0x126   :  { %2441 = vmatprep.subr.bf16.mxu1 %v2795_v40 }
 0x129   :  { %2442 = vmatpush3.bf16.msra.mxu1 %v2604_v63  ;;  %v919_v63 = vmul.f32 0.044715, %v887_v59 }
 0x12a   :  { %2443 = vmatprep.subr.bf16.mxu1 %v2795_v40 }
 0x12d   :  { %2444 = vmatpush3.bf16.msra.mxu1 %v2608_v0  ;;  %v923_v0 = vmul.f32 0.044715, %v891_v62 }
 0x12e   :  { %2445 = vmatprep.subr.bf16.mxu1 %v2795_v40 }
 0x131   :  { %2446 = vmatpush3.bf16.msra.mxu1 %v2612_v1  ;;  %v951_v1 = vadd.f32 %v919_v63, %v3183_v50 }
 0x132   :  { %2447 = vmatprep.subr.bf16.mxu1 %v2795_v40 }
 0x135   :  { %2448 = vmatpush3.bf16.msra.mxu1 %v2613_v2  ;;  %v955_v2 = vadd.f32 %v923_v0, %v3186_v52 }
 0x136   :  { %2449 = vmatprep.subr.bf16.mxu1 %v2795_v40 }
 0x137   :  { %v987_v4 = vmul.f32 0.7978846, %v955_v2 }
 0x139   :  { %2450 = vmatpush3.bf16.msra.mxu1 %v2614_v3  ;;  %v983_v3 = vmul.f32 0.7978846, %v951_v1  ;;  %v2648_v1 = vld [vmem:[%s3768_s11 + $0x18] sm:$0xff]  }
 0x13a   :  { %781 = vmatprep.subr.bf16.mxu1 %v2617_v7 }
 0x1d3   :  { %v752_v5 = vpop.f32.mrf.mxu0 }
 0x1d5   :  { %v754_v7 = vpop.f32.mrf.mxu0 }
 0x1d7   :  { %v756_v12 = vpop.f32.mrf.mxu0 }
 0x1dc   :  { %v373_v14 = vpop.f32.mrf.mxu1 }
 0x1dd   :  { %v377_v16 = vpack.c.bf16 %v373_v14, %v373_v14 }
 0x1de   :  { %v2434_v18 = vpop.f32.mrf.mxu1 }
 0x1df   :  { %2452 = vmatmul.mubr.bf16.vlgmr.msra.gmra.mxu1 %v377_v16  ;;  %v3219_v16 = vadd.f32 %v756_v12, %v3160_v37  ;;  %v758_v18 = vpop.f32.mrf.mxu0 }
 0x1e0   :  { %782 = vmatpush1.bf16.msra.mxu1 %v2615_v15  ;;  %813 = vmatprep.mubr.bf16.mxu1 %v2797_v54 }
 0x1e1   :  { %783 = vmatprep.subr.bf16.mxu1 %v2620_v17  ;;  %v2641_v17 = vld [vmem:[%s3768_s11 + $0x70] sm:$0xff]   ;;  %v762_v33 = vpop.f32.mrf.mxu0 }
 0x1e3   :  { %v764_v45 = vpop.f32.mrf.mxu0 }
 0x1e4   :  { %784 = vmatpush1.bf16.msra.mxu1 %v2618_v19  ;;  %v2642_v19 = vld [vmem:[%s3768_s11 + $0x30] sm:$0xff]  }
 0x1e5   :  { %785 = vmatprep.subr.bf16.mxu1 %v2623_v20  ;;  %v766_v56 = vpop.f32.mrf.mxu0 }
 0x1e6   :  { %v3267_v59 = vadd.f32 %v766_v56, %v3160_v37 }
 0x1e7   :  { %v768_v0 = vpop.f32.mrf.mxu0 }
 0x1e8   :  { %786 = vmatpush1.bf16.msra.mxu1 %v2621_v21 }
 0x1e9   :  { %787 = vmatprep.subr.bf16.mxu1 %v2626_v22  ;;  %v866_v22 = vmul.f32 %v3219_v16, %v3219_v16 }
 0x1ec   :  { %788 = vmatpush1.bf16.msra.mxu1 %v2624_v23  ;;  %v3231_v23 = vadd.f32 %v758_v18, %v3177_v47 }
 0x1ed   :  { %789 = vmatprep.subr.bf16.mxu1 %v2629_v24 }
 0x1ee   :  { %v867_v32 = vmul.f32 %v3231_v23, %v3231_v23 }
 0x1f0   :  { %790 = vmatpush1.bf16.msra.mxu1 %v2627_v25  ;;  %v899_v44 = vmul.f32 %v867_v32, %v3231_v23 }
 0x1f1   :  { %791 = vmatprep.subr.bf16.mxu1 %v2632_v27  ;;  %v2644_v27 = vld [vmem:[%s3768_s11 + $0x28] sm:$0xff]  }
 0x1f2   :  { %v931_v55 = vmul.f32 0.044715, %v899_v44 }
 0x1f4   :  { %792 = vmatpush1.bf16.msra.mxu1 %v2630_v28  ;;  %v963_v63 = vadd.f32 %v931_v55, %v3231_v23 }
 0x1f5   :  { %793 = vmatprep.subr.bf16.mxu1 %v2635_v30 }
 0x1f8   :  { %794 = vmatpush1.bf16.msra.mxu1 %v2633_v31  ;;  %v898_v31 = vmul.f32 %v866_v22, %v3219_v16 }
 0x1f9   :  { %795 = vmatprep.subr.bf16.mxu1 %v2638_v34  ;;  %v2645_v34 = vld [vmem:[%s3768_s11 + $0x60] sm:$0xff]  }
 0x1fa   :  { %v930_v43 = vmul.f32 0.044715, %v898_v31 }
 0x1fc   :  { %796 = vmatpush1.bf16.msra.mxu1 %v2636_v36  ;;  %v3247_v36 = vadd.f32 %v762_v33, %v3160_v37  ;;  %v2652_v33 = vld [vmem:[%s3768_s11 + $0x8] sm:$0xff]  }
 0x1fe   :  { %v870_v49 = vmul.f32 %v3247_v36, %v3247_v36 }
 0x1ff   :  { %814 = vmatmul.mubr.bf16.vlgmr.msra.gmra.mxu1 %v3020_v60  ;;  %v918_v60 = vmul.f32 0.044715, %v886_v46  ;;  %v2646_v46 = vld [vmem:[%s3768_s11 + $0x20] sm:$0xff]  }
 0x200   :  { %823 = vmatprep.mubr.bf16.mxu1 %v2797_v54  ;;  %v902_v57 = vmul.f32 %v870_v49, %v3247_v36 }
 0x201   :  { %v950_v53 = vadd.f32 %v918_v60, %v3163_v39  ;;  %v3260_v60 = vadd.f32 %v764_v45, %v3177_v47 }
 0x202   :  { %v934_v2 = vmul.f32 0.044715, %v902_v57 }
 0x203   :  { %v982_v58 = vmul.f32 0.7978846, %v950_v53  ;;  %v962_v53 = vadd.f32 %v930_v43, %v3219_v16 }
 0x205   :  { %2687 = vtanh.f32 %v982_v58  ;;  %v871_v58 = vmul.f32 %v3260_v60, %v3260_v60  ;;  %v994_v62 = vmul.f32 0.7978846, %v962_v53 }
 0x206   :  { %2689 = vtanh.f32 %v986_v61 }
 0x207   :  { %824 = vmatmul.mubr.bf16.gmra.mxu1 %v3079_v6  ;;  %v2639_v6 = vld [vmem:[%s3768_s11 + $0x78] sm:$0xff]   ;;  %2691 = vtanh.f32 %v983_v3  ;;  %v903_v3 = vmul.f32 %v871_v58, %v3260_v60 }
 0x208   :  { %833 = vmatprep.mubr.bf16.mxu1 %v2797_v54  ;;  %2287 = vmatprep.subr.bf16.mxu0 %v2639_v6  ;;  %2693 = vtanh.f32 %v987_v4  ;;  %v874_v4 = vmul.f32 %v3267_v59, %v3267_v59 }
 0x209   :  { %2288 = vmatpush3.bf16.msra.mxu0 %v2640_v8  ;;  %v772_v8 = vpop.f32.mrf.mxu0  ;;  %v935_v12 = vmul.f32 0.044715, %v903_v3  ;;  %v2654_v3 = vld [vmem:[%s3768_s11] sm:$0xff]  }
 0x20a   :  { %2289 = vmatprep.subr.bf16.mxu0 %v2641_v17  ;;  %v3290_v17 = vadd.f32 %v772_v8, %v3160_v37 }
 0x20b   :  { %v774_v18 = vpop.f32.mrf.mxu0 }
 0x20d   :  { %2290 = vmatpush3.bf16.msra.mxu0 %v2642_v19  ;;  %v2651_v19 = vld [vmem:[%s3768_s11 + $0x48] sm:$0xff]  }
 0x20e   :  { %2291 = vmatprep.subr.bf16.mxu0 %v2643_v26  ;;  %v878_v26 = vmul.f32 %v3290_v17, %v3290_v17 }
 0x20f   :  { %834 = vmatmul.mubr.bf16.gmra.mxu1 %v3092_v10  ;;  %v3213_v10 = vadd.f32 %v754_v7, %v3177_v47  ;;  %v995_v7 = vmul.f32 0.7978846, %v963_v63 }
 0x210   :  { %843 = vmatprep.mubr.bf16.mxu1 %v2797_v54  ;;  %v3202_v54 = vadd.f32 %v752_v5, %v3160_v37  ;;  %v3277_v5 = vadd.f32 %v768_v0, %v3177_v47 }
 0x211   :  { %v863_v15 = vmul.f32 %v3213_v10, %v3213_v10  ;;  %2292 = vmatpush3.bf16.msra.mxu0 %v2644_v27  ;;  %v3300_v27 = vadd.f32 %v774_v18, %v3177_v47 }
 0x212   :  { %v862_v9 = vmul.f32 %v3202_v54, %v3202_v54  ;;  %v2688_v11 = vpop.eup %2687  ;;  %2293 = vmatprep.subr.bf16.mxu0 %v2645_v34 }
 0x213   :  { %v895_v21 = vmul.f32 %v863_v15, %v3213_v10  ;;  %v1046_v24 = vadd.f32 1.0, %v2688_v11  ;;  %v966_v11 = vadd.f32 %v934_v2, %v3247_v36  ;;  %v2650_v15 = vld [vmem:[%s3768_s11 + $0x10] sm:$0xff]   ;;  %v879_v43 = vmul.f32 %v3300_v27, %v3300_v27 }
 0x214   :  { %v894_v14 = vmul.f32 %v862_v9, %v3202_v54  ;;  %v2649_v9 = vld [vmem:[%s3768_s11 + $0x50] sm:$0xff]  }
 0x215   :  { %v927_v30 = vmul.f32 0.044715, %v895_v21  ;;  %v1078_v61 = vmul.f32 0.5, %v1046_v24  ;;  %2294 = vmatpush3.bf16.msra.mxu0 %v2646_v46  ;;  %v967_v21 = vadd.f32 %v935_v12, %v3260_v60  ;;  %v2653_v46 = vld [vmem:[%s3768_s11 + $0x40] sm:$0xff]   ;;  %v911_v53 = vmul.f32 %v879_v43, %v3300_v27 }
 0x216   :  { %v926_v20 = vmul.f32 0.044715, %v894_v14  ;;  %2295 = vmatprep.subr.bf16.mxu0 %v2647_v48  ;;  %v875_v14 = vmul.f32 %v3277_v5, %v3277_v5 }
 0x217   :  { %844 = vmatmul.mubr.bf16.gmra.mxu1 %v3102_v13  ;;  %v2690_v13 = vpop.eup %2689  ;;  %v959_v41 = vadd.f32 %v927_v30, %v3213_v10  ;;  %v999_v30 = vmul.f32 0.7978846, %v967_v21 }
 0x218   :  { %v1050_v25 = vadd.f32 1.0, %v2690_v13  ;;  %v958_v28 = vadd.f32 %v926_v20, %v3202_v54  ;;  %v906_v13 = vmul.f32 %v874_v4, %v3267_v59  ;;  %v998_v20 = vmul.f32 0.7978846, %v966_v11 }
 0x219   :  { %v991_v51 = vmul.f32 0.7978846, %v959_v41  ;;  %v907_v24 = vmul.f32 %v875_v14, %v3277_v5  ;;  %2296 = vmatpush3.bf16.msra.mxu0 %v2648_v1  ;;  %v910_v41 = vmul.f32 %v878_v26, %v3290_v17 }
 0x21a   :  { %v990_v38 = vmul.f32 0.7978846, %v958_v28  ;;  %v1082_v6 = vmul.f32 0.5, %v1050_v25  ;;  %v938_v22 = vmul.f32 0.044715, %v906_v13  ;;  %v2692_v25 = vpop.eup %2691  ;;  %v776_v28 = vpop.f32.mrf.mxu0  ;;  %2297 = vmatprep.subr.bf16.mxu0 %v2649_v9 }
 0x21b   :  { %v939_v32 = vmul.f32 0.044715, %v907_v24  ;;  %v2694_v34 = vpop.eup %2693  ;;  %v3311_v44 = vadd.f32 %v776_v28, %v3160_v37  ;;  %v1047_v57 = vadd.f32 1.0, %v2692_v25 }
 0x21c   :  { %2695 = vtanh.f32 %v990_v38  ;;  %v970_v31 = vadd.f32 %v938_v22, %v3267_v59  ;;  %v1110_v38 = vmul.f32 %v1078_v61, %v3163_v39  ;;  %v778_v45 = vpop.f32.mrf.mxu0  ;;  %v942_v39 = vmul.f32 0.044715, %v910_v41 }
 0x21d   :  { %2697 = vtanh.f32 %v991_v51  ;;  %v971_v49 = vadd.f32 %v939_v32, %v3277_v5  ;;  %v3318_v51 = vadd.f32 %v778_v45, %v3177_v47  ;;  %2298 = vmatpush3.bf16.msra.mxu0 %v2650_v15  ;;  %v882_v37 = vmul.f32 %v3311_v44, %v3311_v44 }
 0x21e   :  { %2699 = vtanh.f32 %v994_v62  ;;  %v1002_v48 = vmul.f32 0.7978846, %v970_v31  ;;  %2299 = vmatprep.subr.bf16.mxu0 %v2651_v19  ;;  %v974_v61 = vadd.f32 %v942_v39, %v3290_v17  ;;  %v943_v47 = vmul.f32 0.044715, %v911_v53  ;;  %v2655_v53 = vld [vmem:[%s3768_s11 + $0xf8] sm:$0xff]  }
 0x21f   :  { %2701 = vtanh.f32 %v995_v7  ;;  %v1003_v55 = vmul.f32 0.7978846, %v971_v49  ;;  %v883_v56 = vmul.f32 %v3318_v51, %v3318_v51  ;;  %v914_v62 = vmul.f32 %v882_v37, %v3311_v44  ;;  %2327 = vmatprep.subr.bf16.mxu1 %v2655_v53 }
 0x220   :  { %2703 = vtanh.f32 %v998_v20  ;;  %v1051_v63 = vadd.f32 1.0, %v2694_v34  ;;  %v1114_v1 = vmul.f32 %v1082_v6, %v3166_v42  ;;  %v1079_v4 = vmul.f32 0.5, %v1047_v57 }
 0x221   :  { %2705 = vtanh.f32 %v999_v30  ;;  %v915_v2 = vmul.f32 %v883_v56, %v3318_v51  ;;  %2300 = vmatpush3.bf16.msra.mxu0 %v2652_v33  ;;  %v1006_v7 = vmul.f32 0.7978846, %v974_v61  ;;  %v975_v8 = vadd.f32 %v943_v47, %v3300_v27 }
 0x222   :  { %2707 = vtanh.f32 %v1002_v48  ;;  %v946_v9 = vmul.f32 0.044715, %v914_v62  ;;  %2301 = vmatprep.subr.bf16.mxu0 %v2653_v46  ;;  %v1083_v11 = vmul.f32 0.5, %v1051_v63  ;;  %v1111_v14 = vmul.f32 %v1079_v4, %v3183_v50  ;;  %v2657_v62 = vld [vmem:[%s3768_s11 + $0xf0] sm:$0xff]  }
 0x223   :  { %2709 = vtanh.f32 %v1003_v55  ;;  %v947_v13 = vmul.f32 0.044715, %v915_v2  ;;  %v1007_v42 = vmul.f32 0.7978846, %v975_v8  ;;  %v1142_v19 = vpack.c.bf16 %v1114_v1, %v1110_v38  ;;  %v2658_v2 = vld [vmem:[%s3768_s11 + $0xb0] sm:$0xff]  }
 0x224   :  { %v978_v6 = vadd.f32 %v946_v9, %v3311_v44  ;;  %v1115_v15 = vmul.f32 %v1083_v11, %v3186_v52  ;;  %2711 = vtanh.f32 %v1006_v7 }
 0x225   :  { %v979_v20 = vadd.f32 %v947_v13, %v3318_v51  ;;  %2302 = vmatpush3.bf16.msra.mxu0 %v2654_v3  ;;  %2713 = vtanh.f32 %v1007_v42 }
 0x226   :  { %v1010_v21 = vmul.f32 0.7978846, %v978_v6  ;;  %v1143_v22 = vpack.c.bf16 %v1115_v15, %v1111_v14  ;;  %v2661_v15 = vld [vmem:[%s3768_s11 + $0xe0] sm:$0xff]  }
 0x227   :  { %v1011_v24 = vmul.f32 0.7978846, %v979_v20  ;;  %v2662_v20 = vld [vmem:[%s3768_s11 + $0xa0] sm:$0xff]  }
 0x228   :  { %2715 = vtanh.f32 %v1010_v21  ;;  %1446 = vmatprep.mubr.bf16.mxu0 %v1143_v22 }
 0x229   :  { %v2696_v58 = vpop.eup %2695  ;;  %2717 = vtanh.f32 %v1011_v24  ;;  %1447 = vmatmul.mubr.bf16.vlgmr.msra.gmra.mxu0 %v1142_v19 }
 0x22a   :  { %v2698_v0 = vpop.eup %2697  ;;  %v1054_v50 = vadd.f32 1.0, %v2696_v58 }
 0x22b   :  { %v2700_v12 = vpop.eup %2699  ;;  %v1055_v25 = vadd.f32 1.0, %v2698_v0 }
 0x22c   :  { %v2702_v18 = vpop.eup %2701  ;;  %v1058_v28 = vadd.f32 1.0, %v2700_v12  ;;  %v1086_v33 = vmul.f32 0.5, %v1054_v50  ;;  %v2660_v12 = vld [vmem:[%s3768_s11 + $0xa8] sm:$0xff]  }
 0x22d   :  { %v1059_v26 = vadd.f32 1.0, %v2702_v18  ;;  %v2704_v30 = vpop.eup %2703  ;;  %v1087_v52 = vmul.f32 0.5, %v1055_v25  ;;  %v2668_v50 = vld [vmem:[%s3768_s11 + $0x88] sm:$0xff]  }
 0x22e   :  { %v2706_v32 = vpop.eup %2705  ;;  %v1090_v34 = vmul.f32 0.5, %v1058_v28  ;;  %v1118_v45 = vmul.f32 %v1086_v33, %v3202_v54  ;;  %v2669_v28 = vld [vmem:[%s3768_s11 + $0xc0] sm:$0xff]  }
 0x22f   :  { %v1091_v31 = vmul.f32 0.5, %v1059_v26  ;;  %v2708_v38 = vpop.eup %2707  ;;  %v1119_v41 = vmul.f32 %v1087_v52, %v3213_v10  ;;  %v1063_v37 = vadd.f32 1.0, %v2706_v32  ;;  %v2656_v10 = vld [vmem:[%s3768_s11 + $0xb8] sm:$0xff]  }
 0x230   :  { %v1122_v46 = vmul.f32 %v1090_v34, %v3219_v16  ;;  %v2710_v48 = vpop.eup %2709  ;;  %v1066_v56 = vadd.f32 1.0, %v2708_v38  ;;  %2328 = vmatpush3.bf16.msra.mxu1 %v2656_v10  ;;  %v2663_v26 = vld [vmem:[%s3768_s11 + $0xd8] sm:$0xff]   ;;  %v538_v34 = vsub.s32 2, %v3139_v29  ;;  %v542_v38 = vsub.s32 3, %v3139_v29 }
 0x231   :  { %v1123_v43 = vmul.f32 %v1091_v31, %v3231_v23  ;;  %v1067_v55 = vadd.f32 1.0, %v2710_v48  ;;  %v1062_v23 = vadd.f32 1.0, %v2704_v30  ;;  %v1095_v54 = vmul.f32 0.5, %v1063_v37  ;;  %v2712_v57 = vpop.eup %2711  ;;  %2329 = vmatprep.subr.bf16.mxu1 %v2657_v62  ;;  %v2670_v30 = vld [vmem:[%s3768_s11 + $0x80] sm:$0xff]  }
 0x232   :  { %v1146_v39 = vpack.c.bf16 %v1122_v46, %v1118_v45  ;;  %v1098_v61 = vmul.f32 0.5, %v1066_v56  ;;  %v2714_v47 = vpop.eup %2713 }
 0x233   :  { %v1147_v49 = vpack.c.bf16 %v1123_v43, %v1119_v41  ;;  %v1099_v16 = vmul.f32 0.5, %v1067_v55  ;;  %v1094_v58 = vmul.f32 0.5, %v1062_v23  ;;  %v1127_v63 = vmul.f32 %v1095_v54, %v3260_v60  ;;  %v2659_v60 = vld [vmem:[%s3768_s11 + $0xe8] sm:$0xff]  }
 0x234   :  { %v1130_v4 = vmul.f32 %v1098_v61, %v3267_v59  ;;  %2330 = vmatpush3.bf16.msra.mxu1 %v2658_v2  ;;  %v3402_v41 = vrot.slane %v3154_v35, %v538_v34  ;;  %v3405_v43 = vrot.slane %v3154_v35, %v542_v38 }
 0x235   :  { %1454 = vmatprep.mubr.bf16.mxu0 %v1147_v49  ;;  %v1131_v0 = vmul.f32 %v1099_v16, %v3277_v5  ;;  %v2716_v1 = vpop.eup %2715  ;;  %v1126_v3 = vmul.f32 %v1094_v58, %v3247_v36  ;;  %v1071_v5 = vadd.f32 1.0, %v2714_v47  ;;  %v1070_v36 = vadd.f32 1.0, %v2712_v57  ;;  %2331 = vmatprep.subr.bf16.mxu1 %v2659_v60 }
 0x236   :  { %1455 = vmatmul.mubr.bf16.gmra.mxu0 %v1146_v39  ;;  %v2718_v7 = vpop.eup %2717  ;;  %v1074_v13 = vadd.f32 1.0, %v2716_v1 }
 0x237   :  { %v1151_v8 = vpack.c.bf16 %v1131_v0, %v1127_v63  ;;  %v1150_v9 = vpack.c.bf16 %v1130_v4, %v1126_v3  ;;  %v1075_v11 = vadd.f32 1.0, %v2718_v7  ;;  %v1103_v59 = vmul.f32 0.5, %v1071_v5 }
 0x238   :  { %2332 = vmatpush3.bf16.msra.mxu1 %v2660_v12  ;;  %v1102_v42 = vmul.f32 0.5, %v1070_v36  ;;  %v1106_v6 = vmul.f32 0.5, %v1074_v13 }
 0x239   :  { %1462 = vmatprep.mubr.bf16.mxu0 %v1151_v8  ;;  %v1107_v14 = vmul.f32 0.5, %v1075_v11  ;;  %v1135_v18 = vmul.f32 %v1103_v59, %v3300_v27  ;;  %2333 = vmatprep.subr.bf16.mxu1 %v2661_v15  ;;  %v2664_v27 = vld [vmem:[%s3768_s11 + $0x98] sm:$0xff]  }
 0x23a   :  { %v1134_v21 = vmul.f32 %v1102_v42, %v3290_v17  ;;  %v1138_v22 = vmul.f32 %v1106_v6, %v3311_v44  ;;  %v2665_v17 = vld [vmem:[%s3768_s11 + $0xd0] sm:$0xff]  }
 0x23b   :  { %v1139_v19 = vmul.f32 %v1107_v14, %v3318_v51  ;;  %v2666_v44 = vld [vmem:[%s3768_s11 + $0x90] sm:$0xff]   ;;  %v2667_v51 = vld [vmem:[%s3768_s11 + $0xc8] sm:$0xff]  }
 0x23c   :  { %2334 = vmatpush3.bf16.msra.mxu1 %v2662_v20  ;;  %v1154_v25 = vpack.c.bf16 %v1138_v22, %v1134_v21 }
 0x23d   :  { %v1155_v24 = vpack.c.bf16 %v1139_v19, %v1135_v18  ;;  %2335 = vmatprep.subr.bf16.mxu1 %v2663_v26 }
 0x23e   :  { %1463 = vmatmul.mubr.bf16.gmra.mxu0 %v1150_v9 }
 0x23f   :  { %1470 = vmatprep.mubr.bf16.mxu0 %v1155_v24 }
 0x240   :  { %2336 = vmatpush3.bf16.msra.mxu1 %v2664_v27 }
 0x241   :  { %2337 = vmatprep.subr.bf16.mxu1 %v2665_v17 }
 0x244   :  { %2338 = vmatpush3.bf16.msra.mxu1 %v2666_v44 }
 0x245   :  { %2339 = vmatprep.subr.bf16.mxu1 %v2667_v51 }
 0x246   :  { %1471 = vmatmul.mubr.bf16.gmra.mxu0 %v1154_v25 }
 0x248   :  { %2340 = vmatpush3.bf16.msra.mxu1 %v2668_v50 }
 0x249   :  { %2341 = vmatprep.subr.bf16.mxu1 %v2669_v28 }
 0x24c   :  { %2342 = vmatpush3.bf16.msra.mxu1 %v2670_v30 }
 0x29f   :  { %v3397_v52 = vpop.f32.mrf.mxu1 }
 0x2a1   :  { %v2453_v31 = vpop.f32.mrf.mxu1 }
 0x2a3   :  { %v479_v32 = vpop.f32.mrf.mxu1 }
 0x2a5   :  { %v2454_v33 = vpop.f32.mrf.mxu1 }
 0x2bf   :  { %v815_v45 = vpop.f32.mrf.mxu1 }
 0x2c0   :  { %v3408_v46 = vadd.f32 %v815_v45, %v3402_v41 }
 0x2c1   :  { %v817_v48 = vpop.f32.mrf.mxu1 }
 0x2c2   :  { %v856_v49 = vmul.f32 %v3408_v46, %v3408_v46  ;;  %v3413_v39 = vadd.f32 %v817_v48, %v3405_v43 }
 0x2c3   :  { %v819_v53 = vpop.f32.mrf.mxu1 }
 0x2c4   :  { %v888_v29 = vmul.f32 %v856_v49, %v3408_v46  ;;  %v857_v37 = vmul.f32 %v3413_v39, %v3413_v39  ;;  %v3419_v35 = vadd.f32 %v819_v53, %v3402_v41 }
 0x2c5   :  { %v821_v55 = vpop.f32.mrf.mxu1 }
 0x2c6   :  { %v920_v10 = vmul.f32 0.044715, %v888_v29  ;;  %v889_v23 = vmul.f32 %v857_v37, %v3413_v39  ;;  %v860_v56 = vmul.f32 %v3419_v35, %v3419_v35  ;;  %v3425_v54 = vadd.f32 %v821_v55, %v3405_v43 }
 0x2c7   :  { %v825_v16 = vpop.f32.mrf.mxu1 }
 0x2c8   :  { %v952_v57 = vadd.f32 %v920_v10, %v3408_v46  ;;  %v921_v58 = vmul.f32 0.044715, %v889_v23  ;;  %v892_v61 = vmul.f32 %v860_v56, %v3419_v35  ;;  %v861_v47 = vmul.f32 %v3425_v54, %v3425_v54 }
 0x2c9   :  { %v3432_v62 = vadd.f32 %v825_v16, %v3402_v41  ;;  %v827_v63 = vpop.f32.mrf.mxu1 }
 0x2ca   :  { %v984_v0 = vmul.f32 0.7978846, %v952_v57  ;;  %v953_v1 = vadd.f32 %v921_v58, %v3413_v39  ;;  %v924_v2 = vmul.f32 0.044715, %v892_v61  ;;  %v893_v3 = vmul.f32 %v861_v47, %v3425_v54 }
 0x2cb   :  { %v864_v4 = vmul.f32 %v3432_v62, %v3432_v62  ;;  %v3439_v7 = vadd.f32 %v827_v63, %v3405_v43  ;;  %v829_v8 = vpop.f32.mrf.mxu1 }
 0x2cc   :  { %2719 = vtanh.f32 %v984_v0  ;;  %v985_v9 = vmul.f32 0.7978846, %v953_v1  ;;  %v956_v60 = vadd.f32 %v924_v2, %v3419_v35  ;;  %v925_v5 = vmul.f32 0.044715, %v893_v3 }
 0x2cd   :  { %v896_v11 = vmul.f32 %v864_v4, %v3432_v62  ;;  %v865_v12 = vmul.f32 %v3439_v7, %v3439_v7  ;;  %v3446_v36 = vadd.f32 %v829_v8, %v3402_v41  ;;  %v831_v13 = vpop.f32.mrf.mxu1 }
 0x2ce   :  { %v988_v59 = vmul.f32 0.7978846, %v956_v60  ;;  %v957_v14 = vadd.f32 %v925_v5, %v3425_v54  ;;  %v3450_v42 = vadd.f32 %v831_v13, %v3405_v43  ;;  %2721 = vtanh.f32 %v985_v9 }
 0x2cf   :  { %v928_v6 = vmul.f32 0.044715, %v896_v11  ;;  %v897_v15 = vmul.f32 %v865_v12, %v3439_v7  ;;  %v868_v18 = vmul.f32 %v3446_v36, %v3446_v36  ;;  %v835_v19 = vpop.f32.mrf.mxu1 }
 0x2d0   :  { %2723 = vtanh.f32 %v988_v59  ;;  %v989_v20 = vmul.f32 0.7978846, %v957_v14  ;;  %v869_v21 = vmul.f32 %v3450_v42, %v3450_v42  ;;  %v3458_v22 = vadd.f32 %v835_v19, %v3402_v41 }
 0x2d1   :  { %v960_v24 = vadd.f32 %v928_v6, %v3432_v62  ;;  %v929_v25 = vmul.f32 0.044715, %v897_v15  ;;  %v900_v26 = vmul.f32 %v868_v18, %v3446_v36  ;;  %v837_v27 = vpop.f32.mrf.mxu1 }
 0x2d2   :  { %2725 = vtanh.f32 %v989_v20  ;;  %v901_v17 = vmul.f32 %v869_v21, %v3450_v42  ;;  %v872_v44 = vmul.f32 %v3458_v22, %v3458_v22  ;;  %v3466_v51 = vadd.f32 %v837_v27, %v3405_v43 }
 0x2d3   :  { %v992_v50 = vmul.f32 0.7978846, %v960_v24  ;;  %v961_v28 = vadd.f32 %v929_v25, %v3439_v7  ;;  %v932_v30 = vmul.f32 0.044715, %v900_v26  ;;  %v839_v31 = vpop.f32.mrf.mxu1 }
 0x2d4   :  { %v933_v32 = vmul.f32 0.044715, %v901_v17  ;;  %v904_v33 = vmul.f32 %v872_v44, %v3458_v22  ;;  %v873_v34 = vmul.f32 %v3466_v51, %v3466_v51  ;;  %v3473_v38 = vadd.f32 %v839_v31, %v3402_v41 }
 0x2d5   :  { %2727 = vtanh.f32 %v992_v50  ;;  %v993_v45 = vmul.f32 0.7978846, %v961_v28  ;;  %v964_v48 = vadd.f32 %v932_v30, %v3446_v36  ;;  %v841_v49 = vpop.f32.mrf.mxu1 }
 0x2d6   :  { %v965_v53 = vadd.f32 %v933_v32, %v3450_v42  ;;  %v936_v29 = vmul.f32 0.044715, %v904_v33  ;;  %v905_v37 = vmul.f32 %v873_v34, %v3466_v51  ;;  %v876_v55 = vmul.f32 %v3473_v38, %v3473_v38 }
 0x2d7   :  { %2729 = vtanh.f32 %v993_v45  ;;  %v996_v10 = vmul.f32 0.7978846, %v964_v48  ;;  %v3481_v23 = vadd.f32 %v841_v49, %v3405_v43  ;;  %v845_v56 = vpop.f32.mrf.mxu1 }
 0x2d8   :  { %v997_v16 = vmul.f32 0.7978846, %v965_v53  ;;  %v968_v57 = vadd.f32 %v936_v29, %v3458_v22  ;;  %v937_v58 = vmul.f32 0.044715, %v905_v37  ;;  %v908_v61 = vmul.f32 %v876_v55, %v3473_v38 }
 0x2d9   :  { %v2720_v47 = vpop.eup %2719  ;;  %2731 = vtanh.f32 %v996_v10  ;;  %v877_v63 = vmul.f32 %v3481_v23, %v3481_v23  ;;  %v3488_v0 = vadd.f32 %v845_v56, %v3402_v41  ;;  %v847_v1 = vpop.f32.mrf.mxu1 }
 0x2da   :  { %v1048_v2 = vadd.f32 1.0, %v2720_v47  ;;  %2733 = vtanh.f32 %v997_v16  ;;  %v1000_v3 = vmul.f32 0.7978846, %v968_v57  ;;  %v969_v4 = vadd.f32 %v937_v58, %v3466_v51 }
 0x2db   :  { %v940_v8 = vmul.f32 0.044715, %v908_v61  ;;  %v909_v9 = vmul.f32 %v877_v63, %v3481_v23  ;;  %v880_v60 = vmul.f32 %v3488_v0, %v3488_v0  ;;  %v3495_v5 = vadd.f32 %v847_v1, %v3405_v43  ;;  %v849_v11 = vpop.f32.mrf.mxu1  ;;  %v2722_v12 = vpop.eup %2721 }
 0x2dc   :  { %2735 = vtanh.f32 %v1000_v3  ;;  %v1001_v13 = vmul.f32 0.7978846, %v969_v4  ;;  %v3498_v59 = vadd.f32 %v849_v11, %v3402_v41  ;;  %v1080_v21 = vmul.f32 0.5, %v1048_v2 }
 0x2dd   :  { %v2724_v14 = vpop.eup %2723  ;;  %v972_v6 = vadd.f32 %v940_v8, %v3473_v38  ;;  %v941_v15 = vmul.f32 0.044715, %v909_v9  ;;  %v912_v18 = vmul.f32 %v880_v60, %v3488_v0  ;;  %v881_v19 = vmul.f32 %v3495_v5, %v3495_v5  ;;  %v851_v20 = vpop.f32.mrf.mxu1 }
 0x2de   :  { %v1052_v24 = vadd.f32 1.0, %v2724_v14  ;;  %2737 = vtanh.f32 %v1001_v13  ;;  %v884_v25 = vmul.f32 %v3498_v59, %v3498_v59  ;;  %v3510_v30 = vadd.f32 %v851_v20, %v3405_v43 }
 0x2df   :  { %v2726_v26 = vpop.eup %2725  ;;  %v1004_v27 = vmul.f32 0.7978846, %v972_v6  ;;  %v973_v41 = vadd.f32 %v941_v15, %v3481_v23  ;;  %v944_v17 = vmul.f32 0.044715, %v912_v18  ;;  %v913_v44 = vmul.f32 %v881_v19, %v3495_v5 }
 0x2e0   :  { %v1084_v50 = vmul.f32 0.5, %v1052_v24  ;;  %v916_v28 = vmul.f32 %v884_v25, %v3498_v59  ;;  %v1049_v31 = vadd.f32 1.0, %v2722_v12  ;;  %v885_v49 = vmul.f32 %v3510_v30, %v3510_v30 }
 0x2e1   :  { %2739 = vtanh.f32 %v1004_v27  ;;  %v1005_v32 = vmul.f32 0.7978846, %v973_v41  ;;  %v976_v33 = vadd.f32 %v944_v17, %v3488_v0  ;;  %v945_v34 = vmul.f32 0.044715, %v913_v44 }
 0x2e2   :  { %v2728_v45 = vpop.eup %2727  ;;  %v948_v48 = vmul.f32 0.044715, %v916_v28  ;;  %v1053_v53 = vadd.f32 1.0, %v2726_v26  ;;  %v1081_v55 = vmul.f32 0.5, %v1049_v31  ;;  %v1112_v43 = vmul.f32 %v1080_v21, %v3408_v46 }
 0x2e3   :  { %2741 = vtanh.f32 %v1005_v32  ;;  %v1008_v29 = vmul.f32 0.7978846, %v976_v33  ;;  %v977_v37 = vadd.f32 %v945_v34, %v3495_v5  ;;  %v917_v16 = vmul.f32 %v885_v49, %v3510_v30 }
 0x2e4   :  { %v2730_v10 = vpop.eup %2729  ;;  %v980_v56 = vadd.f32 %v948_v48, %v3498_v59  ;;  %v1085_v57 = vmul.f32 0.5, %v1053_v53  ;;  %v1116_v58 = vmul.f32 %v1084_v50, %v3419_v35  ;;  %v1113_v3 = vmul.f32 %v1081_v55, %v3413_v39 }
 0x2e5   :  { %2743 = vtanh.f32 %v1008_v29  ;;  %v1009_v61 = vmul.f32 0.7978846, %v977_v37  ;;  %v1057_v47 = vadd.f32 1.0, %v2730_v10  ;;  %v949_v2 = vmul.f32 0.044715, %v917_v16 }
 0x2e6   :  { %v2732_v63 = vpop.eup %2731  ;;  %v1012_v1 = vmul.f32 0.7978846, %v980_v56  ;;  %v1117_v4 = vmul.f32 %v1085_v57, %v3425_v54  ;;  %v1056_v9 = vadd.f32 1.0, %v2728_v45  ;;  %v1144_v14 = vpack.c.bf16 %v1116_v58, %v1112_v43 }
 0x2e7   :  { %v2734_v8 = vpop.eup %2733  ;;  %2745 = vtanh.f32 %v1009_v61  ;;  %v1089_v46 = vmul.f32 0.5, %v1057_v47  ;;  %v1060_v60 = vadd.f32 1.0, %v2732_v63  ;;  %v981_v11 = vadd.f32 %v949_v2, %v3510_v30 }
 0x2e8   :  { %2747 = vtanh.f32 %v1012_v1  ;;  %v1145_v12 = vpack.c.bf16 %v1117_v4, %v1113_v3  ;;  %v1061_v35 = vadd.f32 1.0, %v2734_v8  ;;  %v1088_v39 = vmul.f32 0.5, %v1056_v9  ;;  %v1567_v1 = vld [vmem:[%s3769_s14] sm:$0xff]  ;;  %v2675_v3 = vld [vmem:[%s3770_s13 + $0x18] sm:$0xff]   ;;  %v2676_v8 = vld [vmem:[%s3770_s13 + $0x10] sm:$0xff]  }
 0x2e9   :  { %v2736_v13 = vpop.eup %2735  ;;  %v1092_v6 = vmul.f32 0.5, %v1060_v60  ;;  %v1013_v15 = vmul.f32 0.7978846, %v981_v11  ;;  %v1121_v54 = vmul.f32 %v1089_v46, %v3439_v7  ;;  %2471 = vmatprep.mubr.msk.f32.mxu0 %vm1583_vm2, %v1567_v1  ;;  %v3551_v2 = vpop.f32.mrf.mxu0  ;;  %v2789_v1 = vld [vmem:[%s3763_s8 + $0x28] sm:$0xff] }
 0x2ea   :  { %1511 = vmatprep.mubr.bf16.mxu1 %v1145_v12  ;;  %v1093_v18 = vmul.f32 0.5, %v1061_v35  ;;  %v1120_v27 = vmul.f32 %v1088_v39, %v3432_v62  ;;  %v1064_v41 = vadd.f32 1.0, %v2736_v13 }
 0x2eb   :  { %v2738_v19 = vpop.eup %2737  ;;  %1512 = vmatmul.mubr.bf16.vlgmr.msra.gmra.mxu1 %v1144_v14  ;;  %2749 = vtanh.f32 %v1013_v15  ;;  %v1124_v21 = vmul.f32 %v1092_v6, %v3446_v36  ;;  %v3556_v4 = vpop.f32.mrf.mxu0 }
 0x2ec   :  { %v1125_v20 = vmul.f32 %v1093_v18, %v3450_v42  ;;  %v1065_v24 = vadd.f32 1.0, %v2738_v19  ;;  %v1096_v34 = vmul.f32 0.5, %v1064_v41 }
 0x2ed   :  { %v1148_v50 = vpack.c.bf16 %v1124_v21, %v1120_v27  ;;  %v2306_v46 = vpop.f32.mrf.mxu0 }
 0x2ee   :  { %v2740_v25 = vpop.eup %2739  ;;  %v1149_v26 = vpack.c.bf16 %v1125_v20, %v1121_v54  ;;  %v1097_v31 = vmul.f32 0.5, %v1065_v24  ;;  %v1128_v37 = vmul.f32 %v1096_v34, %v3458_v22 }
 0x2ef   :  { %v1068_v17 = vadd.f32 1.0, %v2740_v25  ;;  %v2307_v9 = vpop.f32.mrf.mxu0 }
 0x2f0   :  { %v2742_v44 = vpop.eup %2741  ;;  %1519 = vmatprep.mubr.bf16.mxu1 %v1149_v26  ;;  %v1129_v36 = vmul.f32 %v1097_v31, %v3466_v51 }
 0x2f1   :  { %v1069_v28 = vadd.f32 1.0, %v2742_v44  ;;  %v1100_v32 = vmul.f32 0.5, %v1068_v17 }
 0x2f2   :  { %v2744_v33 = vpop.eup %2743 }
 0x2f3   :  { %1520 = vmatmul.mubr.bf16.gmra.mxu1 %v1148_v50  ;;  %v1101_v7 = vmul.f32 0.5, %v1069_v28  ;;  %v1132_v62 = vmul.f32 %v1100_v32, %v3473_v38  ;;  %v1072_v55 = vadd.f32 1.0, %v2744_v33 }
 0x2f4   :  { %v2746_v42 = vpop.eup %2745 }
 0x2f5   :  { %v2748_v45 = vpop.eup %2747  ;;  %v1133_v48 = vmul.f32 %v1101_v7, %v3481_v23  ;;  %v1073_v49 = vadd.f32 1.0, %v2746_v42  ;;  %v1152_v43 = vpack.c.bf16 %v1132_v62, %v1128_v37  ;;  %v1104_v58 = vmul.f32 0.5, %v1072_v55 }
 0x2f6   :  { %v1076_v53 = vadd.f32 1.0, %v2748_v45  ;;  %v2309_v60 = vpop.f32.mrf.mxu0 }
 0x2f7   :  { %v1153_v29 = vpack.c.bf16 %v1133_v48, %v1129_v36  ;;  %v1105_v57 = vmul.f32 0.5, %v1073_v49  ;;  %v1136_v47 = vmul.f32 %v1104_v58, %v3488_v0  ;;  %v2673_v0 = vld [vmem:[%s3770_s13 + $0x28] sm:$0xff]   ;;  %v2787_v58 = vld [vmem:[%s3763_s8 + $0x30] sm:$0xff] }
 0x2f8   :  { %v2750_v10 = vpop.eup %2749  ;;  %v1108_v56 = vmul.f32 0.5, %v1076_v53  ;;  %v2310_v11 = vpop.f32.mrf.mxu0 }
 0x2f9   :  { %1527 = vmatprep.mubr.bf16.mxu1 %v1153_v29  ;;  %v1077_v16 = vadd.f32 1.0, %v2750_v10  ;;  %v1137_v23 = vmul.f32 %v1105_v57, %v3495_v5  ;;  %v2672_v5 = vld [vmem:[%s3770_s13 + $0x30] sm:$0xff]  }
 0x2fa   :  { %v1140_v51 = vmul.f32 %v1108_v56, %v3498_v59  ;;  %v2671_v59 = vld [vmem:[%s3770_s13 + $0x38] sm:$0xff]   ;;  %v2312_v12 = vpop.f32.mrf.mxu0 }
 0x2fb   :  { %1528 = vmatmul.mubr.bf16.gmra.mxu1 %v1152_v43  ;;  %v1109_v61 = vmul.f32 0.5, %v1077_v16  ;;  %2495 = vmatprep.subr.bf16.mxu1 %v2671_v59 }
 0x2fc   :  { %v1156_v22 = vpack.c.bf16 %v1140_v51, %v1136_v47  ;;  %2496 = vmatpush3.bf16.msra.mxu1 %v2671_v59  ;;  %v2313_v35 = vpop.f32.mrf.mxu0  ;;  %v2788_v51 = vld [vmem:[%s3763_s8 + $0x38] sm:$0xff]  ;;  %v2220_v47 = vld [vmem:[%s3771_s12] ss:$0 sm:$0xff] }
 0x2fd   :  { %v1141_v38 = vmul.f32 %v1109_v61, %v3510_v30  ;;  %2497 = vmatprep.subr.bf16.mxu1 %v2672_v5  ;;  %v2674_v30 = vld [vmem:[%s3770_s13 + $0x20] sm:$0xff]   ;;  %v2314_v56 = vadd.f32 %v2313_v35, %v2312_v12  ;;  %v2305_v12 = vadd.f32 %v3556_v4, %v3551_v2  ;;  %v2793_v2 = vld [vmem:[%s3763_s8 + $0x8] sm:$0xff] }
 0x2fe   :  { %v2315_v13 = vpop.f32.mrf.mxu0 }
 0x2ff   :  { %v1157_v63 = vpack.c.bf16 %v1141_v38, %v1137_v23  ;;  %v2311_v38 = vadd.f32 %v2310_v11, %v2309_v60 }
 0x300   :  { %2498 = vmatpush3.bf16.msra.mxu1 %v2672_v5  ;;  %v2316_v15 = vpop.f32.mrf.mxu0 }
 0x301   :  { %1535 = vmatprep.mubr.bf16.mxu1 %v1157_v63  ;;  %2499 = vmatprep.subr.bf16.mxu1 %v2673_v0  ;;  %v2317_v37 = vadd.f32 %v2316_v15, %v2315_v13  ;;  %v2791_v13 = vld [vmem:[%s3763_s8 + $0x18] sm:$0xff] }
 0x302   :  { %v2318_v39 = vpop.f32.mrf.mxu0 }
 0x303   :  { %1536 = vmatmul.mubr.bf16.gmra.mxu1 %v1156_v22 }
 0x304   :  { %2500 = vmatpush3.bf16.msra.mxu1 %v2673_v0  ;;  %v2319_v21 = vpop.f32.mrf.mxu0  ;;  %v2308_v0 = vadd.f32 %v2307_v9, %v2306_v46 }
 0x305   :  { %2501 = vmatprep.subr.bf16.mxu1 %v2674_v30  ;;  %v2320_v36 = vadd.f32 %v2319_v21, %v2318_v39  ;;  %v2794_v39 = vld [vmem:[%s3763_s8] sm:$0xff] }
 0x306   :  { %v2321_v26 = vpop.f32.mrf.mxu0 }
 0x308   :  { %2502 = vmatpush3.bf16.msra.mxu1 %v2674_v30  ;;  %v2322_v17 = vpop.f32.mrf.mxu0 }
 0x309   :  { %2503 = vmatprep.subr.bf16.mxu1 %v2675_v3  ;;  %v2323_v42 = vadd.f32 %v2322_v17, %v2321_v26  ;;  %v1569_v26 = vld [vmem:[%s3769_s14 + $0x10] sm:$0xff]  ;;  %v1572_v17 = vld [vmem:[%s3769_s14 + $0x28] sm:$0xff] }
 0x30a   :  { %v2324_v28 = vpop.f32.mrf.mxu0 }
 0x30c   :  { %2504 = vmatpush3.bf16.msra.mxu1 %v2675_v3  ;;  %v2325_v7 = vpop.f32.mrf.mxu0 }
 0x30d   :  { %2505 = vmatprep.subr.bf16.mxu1 %v2676_v8  ;;  %v2326_v62 = vadd.f32 %v2325_v7, %v2324_v28  ;;  %v1575_v28 = vld [vmem:[%s3769_s14 + $0x40] sm:$0xff] }
 0x30e   :  { %v1579_v7 = vld [vmem:[%s3769_s14 + $0x60] sm:$0xff] }
 0x310   :  { %2506 = vmatpush3.bf16.msra.mxu1 %v2676_v8  ;;  %v2790_v8 = vld [vmem:[%s3763_s8 + $0x20] sm:$0xff] }
 0x3ab   :  { %v2343_v14 = vpop.f32.mrf.mxu1 }
 0x3ad   :  { %v2344_v6 = vpop.f32.mrf.mxu1 }
 0x3ae   :  { %v2345_v30 = vadd.f32 %v2344_v6, %v2343_v14  ;;  %v2792_v14 = vld [vmem:[%s3763_s8 + $0x10] sm:$0xff] }
 0x3af   :  { %v2346_v18 = vpop.f32.mrf.mxu1 }
 0x3b0   :  { %v1514_v9 = vadd.f32 %v2345_v30, %v2305_v12 }
 0x3b1   :  { %v2347_v19 = vpop.f32.mrf.mxu1 }
 0x3b2   :  { %v2348_v63 = vadd.f32 %v2347_v19, %v2346_v18 }
 0x3b3   :  { %v2349_v54 = vpop.f32.mrf.mxu1 }
 0x3b4   :  { %v1517_v35 = vadd.f32 %v2348_v63, %v2308_v0 }
 0x3b5   :  { %v2350_v20 = vpop.f32.mrf.mxu1 }
 0x3b6   :  { %v2351_v16 = vadd.f32 %v2350_v20, %v2349_v54  ;;  %v1545_v4 = vadd.f32 %v2793_v2, %v1517_v35  ;;  %v1544_v54 = vadd.f32 %v2794_v39, %v1514_v9 }
 0x3b7   :  { %v2352_v24 = vpop.f32.mrf.mxu1 }
 0x3b8   :  { %v1522_v3 = vadd.f32 %v2351_v16, %v2311_v38  ;;  %v1560_v21 = vadd.f32 %v2220_v47, %v1545_v4 }
 0x3b9   :  { %v2353_v25 = vpop.f32.mrf.mxu1 }
 0x3ba   :  { %v2354_v55 = vadd.f32 %v2353_v25, %v2352_v24  ;;  %v1546_v6 = vadd.f32 %v2792_v14, %v1522_v3  ;;  %v1559_v24 = vadd.f32 %v2220_v47, %v1544_v54  ;;  %v1568_v25 = vld [vmem:[%s3769_s14 + $0x8] sm:$0xff]  ;;  %v1947_v3 = vstv %s3772_s0 }
 0x3bb   :  { %v2355_v27 = vpop.f32.mrf.mxu1 }
 0x3bc   :  { %v1525_v22 = vadd.f32 %v2354_v55, %v2314_v56  ;;  %v1561_v20 = vadd.f32 %v2220_v47, %v1546_v6 }
 0x3bd   :  { %v2356_v41 = vpop.f32.mrf.mxu1 }
 0x3be   :  { %v2357_v49 = vadd.f32 %v2356_v41, %v2355_v27  ;;  %v1547_v15 = vadd.f32 %v2791_v13, %v1525_v22  ;;  %v1570_v27 = vld [vmem:[%s3769_s14 + $0x18] sm:$0xff]  ;;  %v1571_v41 = vld [vmem:[%s3769_s14 + $0x20] sm:$0xff] }
 0x3bf   :  { %v2358_v44 = vpop.f32.mrf.mxu1 }
 0x3c0   :  { %v1530_v57 = vadd.f32 %v2357_v49, %v2317_v37  ;;  %v1562_v19 = vadd.f32 %v2220_v47, %v1547_v15 }
 0x3c1   :  { %v2359_v50 = vpop.f32.mrf.mxu1 }
 0x3c2   :  { %v2360_v45 = vadd.f32 %v2359_v50, %v2358_v44  ;;  %v1548_v60 = vadd.f32 %v2790_v8, %v1530_v57  ;;  %v1573_v44 = vld [vmem:[%s3769_s14 + $0x30] sm:$0xff]  ;;  %v1574_v50 = vld [vmem:[%s3769_s14 + $0x38] sm:$0xff]  ;;  %v1948_v8 = vmul.f32 1.442695, %v1947_v3 }
 0x3c3   :  { %v2361_v31 = vpop.f32.mrf.mxu1 }
 0x3c4   :  { %v1533_v10 = vadd.f32 %v2360_v45, %v2320_v36  ;;  %v1563_v18 = vadd.f32 %v2220_v47, %v1548_v60  ;;  %v1582_v45 = vld [vmem:[%s3769_s14 + $0x78] sm:$0xff]  ;;  %v2677_v36 = vld [vmem:[%s3770_s13 + $0x8] sm:$0xff]   ;;  %2751 = vpow2.f32 %v1948_v8 }
 0x3c5   :  { %v2362_v32 = vpop.f32.mrf.mxu1  ;;  %2507 = vmatprep.subr.bf16.mxu1 %v2677_v36 }
 0x3c6   :  { %v2363_v33 = vadd.f32 %v2362_v32, %v2361_v31  ;;  %v1549_v59 = vadd.f32 %v2789_v1, %v1533_v10  ;;  %v1576_v31 = vld [vmem:[%s3769_s14 + $0x48] sm:$0xff]  ;;  %v1577_v32 = vld [vmem:[%s3769_s14 + $0x50] sm:$0xff]  ;;  %2508 = vmatpush3.bf16.msra.mxu1 %v2677_v36 }
 0x3c7   :  { %v2364_v34 = vpop.f32.mrf.mxu1 }
 0x3c8   :  { %v1538_v53 = vadd.f32 %v2363_v33, %v2323_v42  ;;  %v1564_v46 = vadd.f32 %v2220_v47, %v1549_v59  ;;  %v1578_v33 = vld [vmem:[%s3769_s14 + $0x58] sm:$0xff]  ;;  %v1581_v42 = vld [vmem:[%s3769_s14 + $0x70] sm:$0xff] }
 0x3c9   :  { %v2365_v48 = vpop.f32.mrf.mxu1 }
 0x3ca   :  { %v2366_v29 = vadd.f32 %v2365_v48, %v2364_v34  ;;  %v1550_v61 = vadd.f32 %v2787_v58, %v1538_v53  ;;  %v1580_v34 = vld [vmem:[%s3769_s14 + $0x68] sm:$0xff]  ;;  %v2678_v48 = vld [vmem:[%s3770_s13] sm:$0xff]  }
 0x3cb   :  { %2509 = vmatprep.subr.bf16.mxu1 %v2678_v48 }
 0x3cc   :  { %v1541_v43 = vadd.f32 %v2366_v29, %v2326_v62  ;;  %v1565_v11 = vadd.f32 %v2220_v47, %v1550_v61  ;;  %2510 = vmatpush3.bf16.msra.mxu1 %v2678_v48 }
 0x3ce   :  { %v1551_v23 = vadd.f32 %v2788_v51, %v1541_v43 }
 0x3d0   :  { %v1566_v5 = vadd.f32 %v2220_v47, %v1551_v23 }
 0x3d1   :  { %v2752_v60 = vpop.eup %2751 }
 0x3d2   :  { %2455 = vmatprep.subr.mxu0 %v1566_v5  ;;  %2562 = vpush %v2752_v60 }
 0x3d3   :  { %2456 = vmatpush3.msra.mxu0 %v1566_v5 }
 0x3d4   :  { %2457 = vmatprep.subr.mxu0 %v1565_v11 }
 0x3d5   :  { %2458 = vmatpush3.msra.mxu0 %v1565_v11 }
 0x3d6   :  { %2459 = vmatprep.subr.mxu0 %v1564_v46 }
 0x3d7   :  { %2460 = vmatpush3.msra.mxu0 %v1564_v46 }
 0x3d8   :  { %2461 = vmatprep.subr.mxu0 %v1563_v18 }
 0x3d9   :  { %2462 = vmatpush3.msra.mxu0 %v1563_v18 }
 0x3da   :  { %2463 = vmatprep.subr.mxu0 %v1562_v19 }
 0x3db   :  { %2464 = vmatpush3.msra.mxu0 %v1562_v19 }
 0x3dc   :  { %2465 = vmatprep.subr.mxu0 %v1561_v20 }
 0x3dd   :  { %2466 = vmatpush3.msra.mxu0 %v1561_v20 }
 0x3de   :  { %2467 = vmatprep.subr.mxu0 %v1560_v21 }
 0x3df   :  { %2468 = vmatpush3.msra.mxu0 %v1560_v21 }
 0x3e0   :  { %2469 = vmatprep.subr.mxu0 %v1559_v24 }
 0x3e1   :  { %2470 = vmatpush3.msra.mxu0 %v1559_v24 }
 0x3e2   :  { %2472 = vmatmul.mubr.msk.f32.vlgmr.msra.gmra.mxu0 %vm1583_vm2, %v1568_v25  ;;  %2527 = vmatprep.subr.mxu0 %v2795_v40 }
 0x3e3   :  { %2474 = vmatprep.mubr.msk.f32.mxu0 %vm1583_vm2, %v1569_v26 }
 0x3e6   :  { %2475 = vmatmul.mubr.msk.f32.gmra.mxu0 %vm1583_vm2, %v1570_v27 }
 0x3e7   :  { %2477 = vmatprep.mubr.msk.f32.mxu0 %vm1583_vm2, %v1571_v41 }
 0x3ea   :  { %2478 = vmatmul.mubr.msk.f32.gmra.mxu0 %vm1583_vm2, %v1572_v17 }
 0x3eb   :  { %2480 = vmatprep.mubr.msk.f32.mxu0 %vm1583_vm2, %v1573_v44 }
 0x3ee   :  { %2481 = vmatmul.mubr.msk.f32.gmra.mxu0 %vm1583_vm2, %v1574_v50 }
 0x3ef   :  { %2483 = vmatprep.mubr.msk.f32.mxu0 %vm1583_vm2, %v1575_v28 }
 0x3f2   :  { %2484 = vmatmul.mubr.msk.f32.gmra.mxu0 %vm1583_vm2, %v1576_v31 }
 0x3f3   :  { %2486 = vmatprep.mubr.msk.f32.mxu0 %vm1583_vm2, %v1577_v32 }
 0x3f6   :  { %2487 = vmatmul.mubr.msk.f32.gmra.mxu0 %vm1583_vm2, %v1578_v33 }
 0x3f7   :  { %2489 = vmatprep.mubr.msk.f32.mxu0 %vm1583_vm2, %v1579_v7 }
 0x3fa   :  { %2490 = vmatmul.mubr.msk.f32.gmra.mxu0 %vm1583_vm2, %v1580_v34 }
 0x3fb   :  { %2492 = vmatprep.mubr.msk.f32.mxu0 %vm1583_vm2, %v1581_v42 }
 0x3fe   :  { %2493 = vmatmul.mubr.msk.f32.gmra.mxu0 %vm1583_vm2, %v1582_v45  ;;  %v1951_v45 = vmul.f32 %v3397_v52, %v3397_v52 }
 0x3ff   :  { %2559 = vmatprep.mubr.msk.f32.mxu0 %vm2796_vm0, %v2795_v40 }
 0x403   :  { %s2563_s0 = spop %2562 }
 0x4a2   :  { %v2473_v62 = vpop.f32.mrf.mxu0 }
 0x4a4   :  { %v1698_v49 = vpop.f32.mrf.mxu0 }
 0x4a5   :  { %v1777_v53 = vpack.c.bf16 %v2473_v62, %v1698_v49 }
 0x4a6   :  { %v2476_v29 = vpop.f32.mrf.mxu0 }
 0x4a7   :  { %2511 = vmatprep.mubr.bf16.mxu1 %v1777_v53 }
 0x4a8   :  { %v1708_v37 = vpop.f32.mrf.mxu0 }
 0x4a9   :  { %v1778_v55 = vpack.c.bf16 %v2476_v29, %v1708_v37 }
 0x4aa   :  { %v2479_v10 = vpop.f32.mrf.mxu0 }
 0x4ab   :  { %2512 = vmatmul.mubr.bf16.vlgmr.msra.gmra.mxu1 %v1778_v55 }
 0x4ac   :  { %v1718_v43 = vpop.f32.mrf.mxu0 }
 0x4ad   :  { %v1779_v56 = vpack.c.bf16 %v2479_v10, %v1718_v43 }
 0x4ae   :  { %v2482_v16 = vpop.f32.mrf.mxu0 }
 0x4af   :  { %2515 = vmatprep.mubr.bf16.mxu1 %v1779_v56 }
 0x4b0   :  { %v1728_v57 = vpop.f32.mrf.mxu0 }
 0x4b1   :  { %v1780_v58 = vpack.c.bf16 %v2482_v16, %v1728_v57 }
 0x4b2   :  { %v2485_v61 = vpop.f32.mrf.mxu0 }
 0x4b3   :  { %2516 = vmatmul.mubr.bf16.gmra.mxu1 %v1780_v58 }
 0x4b4   :  { %v1738_v51 = vpop.f32.mrf.mxu0 }
 0x4b5   :  { %v1781_v23 = vpack.c.bf16 %v2485_v61, %v1738_v51 }
 0x4b6   :  { %v2488_v38 = vpop.f32.mrf.mxu0 }
 0x4b7   :  { %2519 = vmatprep.mubr.bf16.mxu1 %v1781_v23 }
 0x4b8   :  { %v1748_v47 = vpop.f32.mrf.mxu0 }
 0x4b9   :  { %v1782_v63 = vpack.c.bf16 %v2488_v38, %v1748_v47 }
 0x4ba   :  { %v2491_v22 = vpop.f32.mrf.mxu0 }
 0x4bb   :  { %2520 = vmatmul.mubr.bf16.gmra.mxu1 %v1782_v63 }
 0x4bc   :  { %v1758_v1 = vpop.f32.mrf.mxu0 }
 0x4bd   :  { %v1783_v59 = vpack.c.bf16 %v2491_v22, %v1758_v1 }
 0x4be   :  { %v2494_v5 = vpop.f32.mrf.mxu0 }
 0x4bf   :  { %2523 = vmatprep.mubr.bf16.mxu1 %v1783_v59 }
 0x4c0   :  { %v1768_v0 = vpop.f32.mrf.mxu0 }
 0x4c1   :  { %v1784_v30 = vpack.c.bf16 %v2494_v5, %v1768_v0 }
 0x4c3   :  { %2524 = vmatmul.mubr.bf16.gmra.mxu1 %v1784_v30 }
 0x56b   :  { %v3662_v11 = vpop.f32.mrf.mxu1 }
 0x56c   :  { %v1961_v7 = vmul.f32 %v3662_v11, %v3662_v11 }
 0x56d   :  { %v3664_v12 = vpop.f32.mrf.mxu1 }
 0x56e   :  { %v1959_v42 = vmul.f32 %v3664_v12, %v3664_v12 }
 0x56f   :  { %v3666_v35 = vpop.f32.mrf.mxu1 }
 0x570   :  { %v1962_v33 = vmul.f32 %v3666_v35, %v3666_v35 }
 0x571   :  { %v3668_v13 = vpop.f32.mrf.mxu1 }
 0x572   :  { %v1960_v34 = vmul.f32 %v3668_v13, %v3668_v13 }
 0x573   :  { %v3670_v15 = vpop.f32.mrf.mxu1 }
 0x574   :  { %v1965_v28 = vmul.f32 %v3670_v15, %v3670_v15 }
 0x575   :  { %v3672_v46 = vpop.f32.mrf.mxu1 }
 0x576   :  { %v1963_v32 = vmul.f32 %v3672_v46, %v3672_v46 }
 0x577   :  { %v3674_v9 = vpop.f32.mrf.mxu1 }
 0x578   :  { %v1966_v50 = vmul.f32 %v3674_v9, %v3674_v9 }
 0x579   :  { %v3676_v14 = vpop.f32.mrf.mxu1 }
 0x57a   :  { %v1964_v31 = vmul.f32 %v3676_v14, %v3676_v14 }
 0x57b   :  { %v3678_v6 = vpop.f32.mrf.mxu1 }
 0x57c   :  { %v1969_v41 = vmul.f32 %v3678_v6, %v3678_v6 }
 0x57d   :  { %v3680_v18 = vpop.f32.mrf.mxu1 }
 0x57e   :  { %v1967_v44 = vmul.f32 %v3680_v18, %v3680_v18 }
 0x57f   :  { %v3682_v2 = vpop.f32.mrf.mxu1 }
 0x580   :  { %v1970_v27 = vmul.f32 %v3682_v2, %v3682_v2 }
 0x581   :  { %v3684_v4 = vpop.f32.mrf.mxu1 }
 0x582   :  { %v1968_v17 = vmul.f32 %v3684_v4, %v3684_v4 }
 0x583   :  { %v3686_v19 = vpop.f32.mrf.mxu1 }
 0x584   :  { %v1973_v25 = vmul.f32 %v3686_v19, %v3686_v19 }
 0x585   :  { %v3688_v39 = vpop.f32.mrf.mxu1 }
 0x586   :  { %v1971_v26 = vmul.f32 %v3688_v39, %v3688_v39 }
 0x587   :  { %v2526_v54 = vpop.f32.mrf.mxu1 }
 0x588   :  { %v1974_v20 = vmul.f32 %v2526_v54, %v2526_v54 }
 0x589   :  { %v3690_v21 = vpop.f32.mrf.mxu1 }
 0x58a   :  { %2005 = vadd.xlane.f32.xlu0 %v1974_v20  ;;  %v1972_v24 = vmul.f32 %v3690_v21, %v3690_v21 }
 0x58c   :  { %2001 = vadd.xlane.f32.xlu1 %v1972_v24 }
 0x58e   :  { %2003 = vadd.xlane.f32.xlu0 %v1973_v25 }
 0x590   :  { %1999 = vadd.xlane.f32.xlu1 %v1971_v26 }
 0x592   :  { %1997 = vadd.xlane.f32.xlu0 %v1970_v27 }
 0x594   :  { %1995 = vadd.xlane.f32.xlu1 %v1969_v41 }
 0x596   :  { %1993 = vadd.xlane.f32.xlu0 %v1968_v17 }
 0x598   :  { %1991 = vadd.xlane.f32.xlu1 %v1967_v44 }
 0x59a   :  { %1989 = vadd.xlane.f32.xlu0 %v1966_v50 }
 0x59c   :  { %1987 = vadd.xlane.f32.xlu1 %v1965_v28 }
 0x59e   :  { %1985 = vadd.xlane.f32.xlu0 %v1964_v31 }
 0x5a0   :  { %1983 = vadd.xlane.f32.xlu1 %v1963_v32 }
 0x5a2   :  { %1981 = vadd.xlane.f32.xlu0 %v1962_v33 }
 0x5a4   :  { %1979 = vadd.xlane.f32.xlu1 %v1961_v7 }
 0x5a6   :  { %1977 = vadd.xlane.f32.xlu0 %v1960_v34 }
 0x5a8   :  { %1975 = vadd.xlane.f32.xlu1 %v1959_v42 }
 0x5aa   :  { %1952 = vadd.xlane.f32.xlu0 %v1951_v45 }
 0x613   :  { %v2006_v36 = vpop.xlane.xlu0 %2005 }
 0x614   :  { %v2022_v48 = vmax.f32 %v2006_v36, 1e-12 }
 0x615   :  { %v2002_v62 = vpop.xlane.xlu1 %2001 }
 0x616   :  { %2753 = vrsqrt.f32 %v2022_v48  ;;  %v2020_v53 = vmax.f32 %v2002_v62, 1e-12 }
 0x617   :  { %v2004_v49 = vpop.xlane.xlu0 %2003 }
 0x618   :  { %v2021_v29 = vmax.f32 %v2004_v49, 1e-12 }
 0x619   :  { %v2000_v37 = vpop.xlane.xlu1 %1999 }
 0x61a   :  { %2755 = vrsqrt.f32 %v2021_v29  ;;  %v2019_v55 = vmax.f32 %v2000_v37, 1e-12 }
 0x61b   :  { %2757 = vrsqrt.f32 %v2020_v53  ;;  %v1998_v10 = vpop.xlane.xlu0 %1997 }
 0x61c   :  { %2759 = vrsqrt.f32 %v2019_v55  ;;  %v2018_v43 = vmax.f32 %v1998_v10, 1e-12  ;;  %v1956_v55 = vstv %s2563_s0 }
 0x61d   :  { %v1996_v56 = vpop.xlane.xlu1 %1995 }
 0x61e   :  { %2761 = vrsqrt.f32 %v2018_v43  ;;  %v2017_v57 = vmax.f32 %v1996_v56, 1e-12 }
 0x61f   :  { %v1994_v61 = vpop.xlane.xlu0 %1993 }
 0x620   :  { %2763 = vrsqrt.f32 %v2017_v57  ;;  %v2016_v23 = vmax.f32 %v1994_v61, 1e-12 }
 0x621   :  { %v1992_v63 = vpop.xlane.xlu1 %1991 }
 0x622   :  { %2765 = vrsqrt.f32 %v2016_v23  ;;  %v2015_v22 = vmax.f32 %v1992_v63, 1e-12 }
 0x623   :  { %v2754_v16 = vpop.eup %2753  ;;  %v1990_v5 = vpop.xlane.xlu0 %1989 }
 0x624   :  { %v2054_v58 = vmul.f32 %v2754_v16, %v2526_v54  ;;  %2767 = vrsqrt.f32 %v2015_v22  ;;  %v2014_v0 = vmax.f32 %v1990_v5, 1e-12 }
 0x625   :  { %v1988_v8 = vpop.xlane.xlu1 %1987 }
 0x626   :  { %2528 = vmatpush3.xpose.msra.mxu0 %v2054_v58  ;;  %2769 = vrsqrt.f32 %v2014_v0  ;;  %v2013_v60 = vmax.f32 %v1988_v8, 1e-12 }
 0x627   :  { %v2756_v51 = vpop.eup %2755  ;;  %2529 = vmatprep.subr.mxu0 %v2795_v40  ;;  %v1986_v20 = vpop.xlane.xlu0 %1985 }
 0x628   :  { %v2053_v38 = vmul.f32 %v2756_v51, %v3686_v19  ;;  %v2758_v47 = vpop.eup %2757  ;;  %2771 = vrsqrt.f32 %v2013_v60 }
 0x629   :  { %v2052_v1 = vmul.f32 %v2758_v47, %v3690_v21  ;;  %v2760_v59 = vpop.eup %2759  ;;  %v2012_v21 = vmax.f32 %v1986_v20, 1e-12 }
 0x62a   :  { %2530 = vmatpush3.xpose.msra.mxu0 %v2053_v38  ;;  %v2051_v30 = vmul.f32 %v2760_v59, %v3688_v39  ;;  %v1984_v39 = vpop.xlane.xlu1 %1983 }
 0x62b   :  { %2531 = vmatprep.subr.mxu0 %v2795_v40  ;;  %v2762_v3 = vpop.eup %2761  ;;  %2773 = vrsqrt.f32 %v2012_v21  ;;  %v2011_v26 = vmax.f32 %v1984_v39, 1e-12  ;;  %v1982_v27 = vpop.xlane.xlu0 %1981 }
 0x62c   :  { %v2050_v19 = vmul.f32 %v2762_v3, %v3682_v2  ;;  %v2010_v17 = vmax.f32 %v1982_v27, 1e-12 }
 0x62d   :  { %v2764_v54 = vpop.eup %2763  ;;  %2775 = vrsqrt.f32 %v2011_v26 }
 0x62e   :  { %2532 = vmatpush3.xpose.msra.mxu0 %v2052_v1  ;;  %v2049_v24 = vmul.f32 %v2764_v54, %v3678_v6  ;;  %v1980_v6 = vpop.xlane.xlu1 %1979  ;;  %2777 = vrsqrt.f32 %v2010_v17 }
 0x62f   :  { %2533 = vmatprep.subr.mxu0 %v2795_v40  ;;  %v2766_v25 = vpop.eup %2765  ;;  %v1978_v28 = vpop.xlane.xlu0 %1977  ;;  %v2009_v31 = vmax.f32 %v1980_v6, 1e-12 }
 0x630   :  { %v2048_v41 = vmul.f32 %v2766_v25, %v3684_v4  ;;  %v2008_v4 = vmax.f32 %v1978_v28, 1e-12 }
 0x631   :  { %v2768_v2 = vpop.eup %2767  ;;  %2779 = vrsqrt.f32 %v2009_v31 }
 0x632   :  { %2534 = vmatpush3.xpose.msra.mxu0 %v2051_v30  ;;  %v2047_v44 = vmul.f32 %v2768_v2, %v3680_v18  ;;  %v1976_v42 = vpop.xlane.xlu1 %1975  ;;  %2781 = vrsqrt.f32 %v2008_v4 }
 0x633   :  { %2535 = vmatprep.subr.mxu0 %v2795_v40  ;;  %v2770_v50 = vpop.eup %2769  ;;  %v1953_v7 = vpop.xlane.xlu0 %1952  ;;  %v2007_v36 = vmax.f32 %v1976_v42, 1e-12 }
 0x634   :  { %v2046_v32 = vmul.f32 %v2770_v50, %v3674_v9  ;;  %v1954_v45 = vmax.f32 %v1953_v7, 1e-12 }
 0x635   :  { %v2772_v33 = vpop.eup %2771 }
 0x636   :  { %2536 = vmatpush3.xpose.msra.mxu0 %v2050_v19  ;;  %v2045_v34 = vmul.f32 %v2772_v33, %v3670_v15  ;;  %2783 = vrsqrt.f32 %v1954_v45 }
 0x637   :  { %2537 = vmatprep.subr.mxu0 %v2795_v40  ;;  %2785 = vrsqrt.f32 %v2007_v36 }
 0x638   :  { %v2774_v18 = vpop.eup %2773 }
 0x639   :  { %v2044_v48 = vmul.f32 %v2774_v18, %v3676_v14 }
 0x63a   :  { %2538 = vmatpush3.xpose.msra.mxu0 %v2049_v24  ;;  %v2776_v9 = vpop.eup %2775 }
 0x63b   :  { %2539 = vmatprep.subr.mxu0 %v2795_v40  ;;  %v2043_v62 = vmul.f32 %v2776_v9, %v3672_v46  ;;  %v2778_v49 = vpop.eup %2777 }
 0x63c   :  { %v2042_v15 = vmul.f32 %v2778_v49, %v3666_v35 }
 0x63e   :  { %2540 = vmatpush3.xpose.msra.mxu0 %v2048_v41  ;;  %v2780_v53 = vpop.eup %2779 }
 0x63f   :  { %2541 = vmatprep.subr.mxu0 %v2795_v40  ;;  %v2041_v14 = vmul.f32 %v2780_v53, %v3662_v11  ;;  %v2782_v29 = vpop.eup %2781 }
 0x640   :  { %v2040_v46 = vmul.f32 %v2782_v29, %v3668_v13 }
 0x642   :  { %2542 = vmatpush3.xpose.msra.mxu0 %v2047_v44 }
 0x643   :  { %2543 = vmatprep.subr.mxu0 %v2795_v40  ;;  %v2784_v37 = vpop.eup %2783 }
 0x644   :  { %v2786_v10 = vpop.eup %2785  ;;  %v1957_v43 = vmul.f32 %v2784_v37, %v1956_v55 }
 0x645   :  { %v2039_v35 = vmul.f32 %v2786_v10, %v3664_v12 }
 0x646   :  { %2544 = vmatpush3.xpose.msra.mxu0 %v2046_v32  ;;  %v1958_v56 = vmul.f32 %v1957_v43, %v3397_v52 }
 0x647   :  { %2545 = vmatprep.subr.mxu0 %v2795_v40 }
 0x64a   :  { %2546 = vmatpush3.xpose.msra.mxu0 %v2045_v34 }
 0x64b   :  { %2547 = vmatprep.subr.mxu0 %v2795_v40 }
 0x64e   :  { %2548 = vmatpush3.xpose.msra.mxu0 %v2044_v48 }
 0x64f   :  { %2549 = vmatprep.subr.mxu0 %v2795_v40 }
 0x652   :  { %2550 = vmatpush3.xpose.msra.mxu0 %v2043_v62 }
 0x653   :  { %2551 = vmatprep.subr.mxu0 %v2795_v40 }
 0x656   :  { %2552 = vmatpush3.xpose.msra.mxu0 %v2042_v15 }
 0x657   :  { %2553 = vmatprep.subr.mxu0 %v2795_v40 }
 0x65a   :  { %2554 = vmatpush3.xpose.msra.mxu0 %v2041_v14 }
 0x65b   :  { %2555 = vmatprep.subr.mxu0 %v2795_v40 }
 0x65e   :  { %2556 = vmatpush3.xpose.msra.mxu0 %v2040_v46 }
 0x65f   :  { %2557 = vmatprep.subr.mxu0 %v2795_v40 }
 0x662   :  { %2558 = vmatpush3.xpose.msra.mxu0 %v2039_v35 }
 0x665   :  { %2560 = vmatmul.mubr.f32.vlgmr.msra.gmra.mxu0 %v1958_v56 }
 0x725   :  { %v2121_v11 = vpop.f32.mrf.mxu0 }
 0x726   :  { %2125 = vst [vmem:[%s3773_s15] sm:$0xff] %v2121_v11 }
 0x727   :  { %v2561_v16 = vpop.f32.mrf.mxu0 }

</bundles_post_ra>
